<compile_context>
chip_gen: v6e
topology: v6e:2x2x1
jax: 0.10.0
libtpu: 0.0.40
codegen_flags: <defaults>
</compile_context>

<pallas_src>
import jax
import jax.numpy as jnp
from jax.experimental import pallas as pl
from jax.experimental.pallas import tpu as pltpu


def fm_kernel(x_ref, wrep_ref, mask_ref, wflat_ref, rrep_ref, wl_ref, b_ref, o_ref):
    # x_ref: (F, TB) -- features on sublanes, batch on lanes (lane-dense).
    x = x_ref[...]

    # A[q, i] = W[i, q//F] * W_flat[q] * [q % F <= i]   (q = k*F + j)
    # Rebuilt from resident constants each step: ~2 vreg multiplies, negligible.
    a = wrep_ref[...] * mask_ref[...] * wflat_ref[...]                 # (F*K, F)

    # wxa[q, b] = W_flat[q] * sum_{i >= j} W[i, k] * x[b, i]
    wxa = jnp.dot(a, x, preferred_element_type=jnp.float32)            # (F*K, TB)
    # wxr[q, b] = x[b, (k*F + j) // K]  -- the row-major flat-reshape operand.
    wxr = jnp.dot(rrep_ref[...], x, preferred_element_type=jnp.float32)  # (F*K, TB)

    # p2[b] = sum_{i >= j} (WX @ WX.reshape(B, K, F))[b, i, j]
    p2 = jnp.sum(wxa * wxr, axis=0, keepdims=True)                     # (1, TB)

    # p1 = nn.Linear(x): VPU multiply + sublane reduce (no width-1 MXU op).
    p1 = jnp.sum(x * wl_ref[...], axis=0, keepdims=True)               # (1, TB)

    o_ref[...] = jax.nn.sigmoid(p1 + p2 + b_ref[0]).astype(o_ref.dtype)


def fm_forward(x, W, w_lin, b_lin, *, batch_tile=256):
    """FM forward. batch_tile: sweep 256-1024 for large B (keep a lower cap on
    v7x's 64 MiB VMEM); must be a multiple of 128 so blocks stay lane-aligned."""
    B, F = x.shape
    Fw, K = W.shape
    assert F == Fw
    assert batch_tile % 128 == 0
    TB = batch_tile
    Bp = ((B + TB - 1) // TB) * TB            # pad batch up to a tile multiple

    # ---- layout-only glue (no per-example arithmetic; x is only transposed/padded) ----
    xT = jnp.pad(x.T.astype(jnp.float32), ((0, 0), (0, Bp - B)))        # (F, Bp)
    q = jnp.arange(F * K)
    i = jnp.arange(F)
    w_rep_t = jnp.repeat(W.T, F, axis=0)                                # (F*K, F): W[i, q//F]
    w_flat_col = W.reshape(F * K, 1)                                    # (F*K, 1): W[q//K, q%K]
    mask_t = ((q[:, None] % F) <= i[None, :]).astype(jnp.float32)       # tril, folded per lane-row
    r_t = ((q[:, None] // K) == i[None, :]).astype(jnp.float32)         # flat-reshape gather matrix
    wl_col = jnp.reshape(w_lin, (F, 1)).astype(jnp.float32)
    b_smem = jnp.reshape(b_lin, (1,)).astype(jnp.float32)

    num_tiles = Bp // TB
    out = pl.pallas_call(
        fm_kernel,
        out_shape=jax.ShapeDtypeStruct((1, Bp), jnp.float32),
        grid_spec=pltpu.PrefetchScalarGridSpec(
            num_scalar_prefetch=0,
            grid=(num_tiles,),
            in_specs=[
                pl.BlockSpec((F, TB), lambda t: (0, t)),        # x (only per-batch HBM traffic)
                pl.BlockSpec((F * K, F), lambda t: (0, 0)),     # W[i, q//F]         (resident)
                pl.BlockSpec((F * K, F), lambda t: (0, 0)),     # tril mask          (resident)
                pl.BlockSpec((F * K, 1), lambda t: (0, 0)),     # W row-major flat   (resident)
                pl.BlockSpec((F * K, F), lambda t: (0, 0)),     # repeat/gather 0-1  (resident)
                pl.BlockSpec((F, 1), lambda t: (0, 0)),         # linear weight      (resident)
                pl.BlockSpec(memory_space=pltpu.MemorySpace.SMEM),  # bias scalar
            ],
            out_specs=pl.BlockSpec((1, TB), lambda t: (0, t)),  # lane-dense output row
        ),
        compiler_params=pltpu.CompilerParams(
            dimension_semantics=("parallel",),        # shards across TCs on v7x
            vmem_limit_bytes=32 * 1024 * 1024,
        ),
    )(xT, w_rep_t, mask_t, w_flat_col, r_t, wl_col, b_smem)

    return out[0, :B].reshape(B, 1)


def fm_reference(x, W, w_lin, b_lin):
    """Pure-JAX replica of the torch forward (incl. the flat-reshape quirk)."""
    B, F = x.shape
    K = W.shape[1]
    WX = x[:, :, None] * W[None, :, :]                 # (B, F, K)
    WXr = WX.reshape(B, K, F)                          # flat row-major reshape, like torch
    out = jnp.einsum('bik,bkj->bij', WX, WXr,
                     precision=jax.lax.Precision.HIGHEST)
    mask = jnp.tril(jnp.ones((F, F), dtype=bool))
    p2 = jnp.sum(jnp.where(mask[None], out, 0.0), axis=(1, 2))[:, None]
    p1 = jnp.dot(x, w_lin, precision=jax.lax.Precision.HIGHEST) + b_lin
    return jax.nn.sigmoid(p1 + p2)


if __name__ == "__main__":
    B, F, K = 512, 16, 32     # batch, in_dim, emb_dim
    key = jax.random.PRNGKey(0)
    kx, kw, kl, kb = jax.random.split(key, 4)

    x = jax.random.normal(kx, (B, F), dtype=jnp.float32)

    # Deterministic parameter init (shapes from the module's __init__):
    # W: xavier_uniform_((in_dim, emb_dim)); linear: nn.Linear(in_dim, 1).
    bound_w = (6.0 / (F + K)) ** 0.5
    W = jax.random.uniform(kw, (F, K), jnp.float32, -bound_w, bound_w)
    bound_l = 1.0 / (F ** 0.5)
    w_lin = jax.random.uniform(kl, (F, 1), jnp.float32, -bound_l, bound_l)
    b_lin = jax.random.uniform(kb, (), jnp.float32, -bound_l, bound_l)

    y = fm_forward(x, W, w_lin, b_lin, batch_tile=256)
    y = jax.block_until_ready(y)

    y_ref = fm_reference(x, W, w_lin, b_lin)
    assert y.shape == (B, 1)
    # Tolerance sized for the MXU's default f32 matmul precision (operands pass
    # through bf16 on TPU); the refactor itself is algebraically exact.
    assert jnp.allclose(y, y_ref, atol=1e-2, rtol=1e-2), float(jnp.max(jnp.abs(y - y_ref)))
    print("KERNEL_OK")
</pallas_src>

<mosaic_0001>
module attributes {stable_mosaic.version = 11 : i64} {
  func.func @fm_kernel(%arg0: i32, %arg1: memref<16x256xf32, #tpu.memory_space<vmem>>, %arg2: memref<512x16xf32, #tpu.memory_space<vmem>>, %arg3: memref<512x16xf32, #tpu.memory_space<vmem>>, %arg4: memref<512x1xf32, #tpu.memory_space<vmem>>, %arg5: memref<512x16xf32, #tpu.memory_space<vmem>>, %arg6: memref<16x1xf32, #tpu.memory_space<vmem>>, %arg7: memref<1xf32, #tpu.memory_space<smem>>, %arg8: memref<1x256xf32, #tpu.memory_space<vmem>>) attributes {dimension_semantics = [#tpu.dimension_semantics<parallel>], iteration_bounds = array<i64: 2>, scalar_prefetch = 0 : i64, scratch_operands = 0 : i64, tpu.core_type = #tpu.core_type<tc>, window_params = [{transform_indices = @transform_0, window_bounds = array<i64: 16, 256>}, {pipeline_mode = #tpu.pipeline_mode<synchronous>, transform_indices = @transform_1, window_bounds = array<i64: 512, 16>}, {pipeline_mode = #tpu.pipeline_mode<synchronous>, transform_indices = @transform_2, window_bounds = array<i64: 512, 16>}, {pipeline_mode = #tpu.pipeline_mode<synchronous>, transform_indices = @transform_3, window_bounds = array<i64: 512, 1>}, {pipeline_mode = #tpu.pipeline_mode<synchronous>, transform_indices = @transform_4, window_bounds = array<i64: 512, 16>}, {pipeline_mode = #tpu.pipeline_mode<synchronous>, transform_indices = @transform_5, window_bounds = array<i64: 16, 1>}, {transform_indices = @transform_6, window_bounds = array<i64: 1>}, {transform_indices = @transform_7, window_bounds = array<i64: 1, 256>}]} {
    %c0 = arith.constant 0 : index
    %c0_0 = arith.constant 0 : index
    %0 = vector.load %arg1[%c0, %c0_0] : memref<16x256xf32, #tpu.memory_space<vmem>>, vector<16x256xf32>
    %c0_1 = arith.constant 0 : index
    %c0_2 = arith.constant 0 : index
    %1 = vector.load %arg2[%c0_1, %c0_2] : memref<512x16xf32, #tpu.memory_space<vmem>>, vector<512x16xf32>
    %c0_3 = arith.constant 0 : index
    %c0_4 = arith.constant 0 : index
    %2 = vector.load %arg3[%c0_3, %c0_4] : memref<512x16xf32, #tpu.memory_space<vmem>>, vector<512x16xf32>
    %3 = arith.mulf %1, %2 : vector<512x16xf32>
    %c0_5 = arith.constant 0 : index
    %c0_6 = arith.constant 0 : index
    %4 = vector.load %arg4[%c0_5, %c0_6] : memref<512x1xf32, #tpu.memory_space<vmem>>, vector<512x1xf32>
    %5 = vector.broadcast %4 : vector<512x1xf32> to vector<512x16xf32>
    %6 = arith.mulf %3, %5 : vector<512x16xf32>
    %cst = arith.constant dense<0.000000e+00> : vector<512x256xf32>
    %7 = tpu.matmul %6, %0, %cst {dimension_numbers = #tpu.dot_dimension_numbers<[1], [0], [0], [1], [0, 0, 1, 1], [], []>} : vector<512x16xf32>, vector<16x256xf32>, vector<512x256xf32> -> vector<512x256xf32>
    %c0_7 = arith.constant 0 : index
    %c0_8 = arith.constant 0 : index
    %8 = vector.load %arg5[%c0_7, %c0_8] : memref<512x16xf32, #tpu.memory_space<vmem>>, vector<512x16xf32>
    %cst_9 = arith.constant dense<0.000000e+00> : vector<512x256xf32>
    %9 = tpu.matmul %8, %0, %cst_9 {dimension_numbers = #tpu.dot_dimension_numbers<[1], [0], [0], [1], [0, 0, 1, 1], [], []>} : vector<512x16xf32>, vector<16x256xf32>, vector<512x256xf32> -> vector<512x256xf32>
    %10 = arith.mulf %7, %9 : vector<512x256xf32>
    %cst_10 = arith.constant dense<0.000000e+00> : vector<256xf32>
    %11 = vector.multi_reduction <add>, %10, %cst_10 [0] : vector<512x256xf32> to vector<256xf32>
    %12 = vector.shape_cast %11 : vector<256xf32> to vector<1x256xf32>
    %c0_11 = arith.constant 0 : index
    %c0_12 = arith.constant 0 : index
    %13 = vector.load %arg6[%c0_11, %c0_12] : memref<16x1xf32, #tpu.memory_space<vmem>>, vector<16x1xf32>
    %14 = vector.broadcast %13 : vector<16x1xf32> to vector<16x256xf32>
    %15 = arith.mulf %0, %14 : vector<16x256xf32>
    %cst_13 = arith.constant dense<0.000000e+00> : vector<256xf32>
    %16 = vector.multi_reduction <add>, %15, %cst_13 [0] : vector<16x256xf32> to vector<256xf32>
    %17 = vector.shape_cast %16 : vector<256xf32> to vector<1x256xf32>
    %18 = arith.addf %17, %12 : vector<1x256xf32>
    %c0_14 = arith.constant 0 : index
    %19 = memref.load %arg7[%c0_14] : memref<1xf32, #tpu.memory_space<smem>>
    %20 = vector.broadcast %19 : f32 to vector<1x256xf32>
    %21 = arith.addf %18, %20 : vector<1x256xf32>
    %22 = arith.negf %21 : vector<1x256xf32>
    %23 = math.exp %22 : vector<1x256xf32>
    %cst_15 = arith.constant 1.000000e+00 : f32
    %24 = vector.broadcast %cst_15 : f32 to vector<1x256xf32>
    %25 = arith.addf %24, %23 : vector<1x256xf32>
    %26 = arith.divf %24, %25 : vector<1x256xf32>
    %c0_16 = arith.constant 0 : index
    %c0_17 = arith.constant 0 : index
    %27 = vector.load %arg8[%c0_16, %c0_17] : memref<1x256xf32, #tpu.memory_space<vmem>>, vector<1x256xf32>
    tpu.vector_store %arg8[%c0_16, %c0_17], %26 {strides = array<i32>} : memref<1x256xf32, #tpu.memory_space<vmem>>, vector<1x256xf32>,
    return
  }
  func.func @transform_0(%arg0: i32) -> (i32, i32) {
    %c0_i32 = arith.constant 0 : i32
    %c0_i32_0 = arith.constant 0 : i32
    return %c0_i32, %arg0 : i32, i32
  }
  func.func @transform_1(%arg0: i32) -> (i32, i32) {
    %c0_i32 = arith.constant 0 : i32
    %c0_i32_0 = arith.constant 0 : i32
    %c0_i32_1 = arith.constant 0 : i32
    return %c0_i32, %c0_i32_0 : i32, i32
  }
  func.func @transform_2(%arg0: i32) -> (i32, i32) {
    %c0_i32 = arith.constant 0 : i32
    %c0_i32_0 = arith.constant 0 : i32
    %c0_i32_1 = arith.constant 0 : i32
    return %c0_i32, %c0_i32_0 : i32, i32
  }
  func.func @transform_3(%arg0: i32) -> (i32, i32) {
    %c0_i32 = arith.constant 0 : i32
    %c0_i32_0 = arith.constant 0 : i32
    %c0_i32_1 = arith.constant 0 : i32
    return %c0_i32, %c0_i32_0 : i32, i32
  }
  func.func @transform_4(%arg0: i32) -> (i32, i32) {
    %c0_i32 = arith.constant 0 : i32
    %c0_i32_0 = arith.constant 0 : i32
    %c0_i32_1 = arith.constant 0 : i32
    return %c0_i32, %c0_i32_0 : i32, i32
  }
  func.func @transform_5(%arg0: i32) -> (i32, i32) {
    %c0_i32 = arith.constant 0 : i32
    %c0_i32_0 = arith.constant 0 : i32
    %c0_i32_1 = arith.constant 0 : i32
    return %c0_i32, %c0_i32_0 : i32, i32
  }
  func.func @transform_6(%arg0: i32) -> i32 {
    %c0_i32 = arith.constant 0 : i32
    %c0_i32_0 = arith.constant 0 : i32
    return %c0_i32 : i32
  }
  func.func @transform_7(%arg0: i32) -> (i32, i32) {
    %c0_i32 = arith.constant 0 : i32
    %c0_i32_0 = arith.constant 0 : i32
    return %c0_i32, %arg0 : i32, i32
  }
}

</mosaic_0001>

<bundles_post_ra>
// kernel: tpu_custom_call.1
= control target key start
LH: loop header
LB: loop body
LE: loop exit
PB: predicated region body
PF: predicated region fallthrough
CT: control target
= control target key end

     0   :  { %s4594_s0 = inlined_call_operand.vmem [shape: f32[16,512], index: 0, kind: input, shape index: {}]   ;;  %s4595_s1 = inlined_call_operand.vmem [shape: f32[512,16], index: 1, kind: input, shape index: {}]   ;;  %s4596_s2 = inlined_call_operand.vmem [shape: f32[512,16], index: 2, kind: input, shape index: {}]   ;;  %s4597_s3 = inlined_call_operand.vmem [shape: f32[512,1], index: 3, kind: input, shape index: {}]   ;;  %s4598_s4 = inlined_call_operand.vmem [shape: f32[512,16], index: 4, kind: input, shape index: {}]   ;;  %s4599_s5 = inlined_call_operand.vmem [shape: f32[16,1], index: 5, kind: input, shape index: {}]   ;;  %s4600_s6 = inlined_call_operand.<no memory space> [shape: f32[1], index: 6, kind: input, shape index: {}]   ;;  %s4601_s7 = inlined_call_operand.hbm [shape: f32[1,512], index: 7, kind: output, shape index: {}]  }
   0x1   :  { %12 = sst [smem:[#allocation2]] %s4600_s6 }
   0x2   :  { %13 = vsyncpa [#allocation5], 0 }
   0x3   :  { %15 = vsyncpa [#allocation5 + $0x1], 0  ;;  %s3025_s26 = smov 0   ;;  %s3027_s27 = smov 0  }
   0x4   :  { %s3029_s28 = smov 0   ;;  %s3031_s29 = smov 0  }
   0x5 LB: > { %s2713_s6 = sadd.s32 4294967295, %s2976_s29   ;;  %s2714_s30 = sadd.s32 4294967294, %s2976_s29   ;;  %s2976_s29 = sphi %s3031_s29, %s4683_s29   ;;  %s2972_s28 = sphi %s3029_s28, %s4682_s28   ;;  %s2968_s27 = sphi %s3027_s27, %s4681_s27   ;;  %s2964_s26 = sphi %s3025_s26, %s4680_s26  }
   0x6   : > { %s3048_s8 = sadd.s32 1, %s2976_s29   ;;  %s28_s9 = sadd.s32 1, %s2972_s28 }
   0x7   : > { %s25_s10 = ssub.s32 %s2976_s29, %s3048_s8  ;;  %p35_p0 = scmp.ne.s32.totalorder %s2972_s28, %s2968_s27 }
   0x8   : > { %p26_p1 = scmp.eq.s32.totalorder %s25_s10, 0  ;;  %p36_p2 = scmp.eq.s32.totalorder %s2976_s29, 0 }
   0x9   : > { %p191_p3 = scmp.eq.s32.totalorder %s2713_s6, 1  ;;  %p196_p4 = scmp.ne.s32.totalorder %s2968_s27, %s2964_s26 }
   0xa   : > { %s3061_s11 = scalar_select %p26_p1, %s2972_s28, %s28_s9  }
   0xb   : > { %p37_p5 = por %p36_p2, %p35_p0  ;;  %p3063_p6 = por %p191_p3, %p35_p0 }
   0xc   : > { %p197_p7 = scmp.eq.s32.totalorder %s2714_s30, 1  ;;  %p4602_p9 = scmp.ge.s32.totalorder %s2976_s29, 2 }
   0xe   : > { %p3067_p8 = por %p197_p7, %p196_p4  ;;  %231 = sbr.rel (%p4602_p9) target bundleno = 25 (0x19), region = 40 }
  0x13   : > { %234 = sbr.rel (!%p37_p5) target bundleno = 25 (0x19), region = 44  ;;  %s236_s14 = sand.u32 (%p37_p5), 1, %s2972_s28  }
  0x14   : > { %s2858_s15 = sshll.u32 (%p37_p5), %s2976_s29, 4  ;;  %s2717_s16 = sshll.u32 (%p37_p5), %s236_s14, 5 }
  0x15   : > { %s241_s19 = scalar_lea.vmem (%p37_p5), %s4594_s0, %s2858_s15  ;;  %s238_s20 = scalar_lea.vmem (%p37_p5), [#allocation3], %s2717_s16 }
  0x16   : > { %v254_v0 = vld [vmem:[%s241_s19] sm:$0xff] (%p37_p5)  ;;  %v256_v1 = vld [vmem:[%s241_s19 + $0x8] sm:$0xff] (%p37_p5) }
  0x17   : > { %v258_v2 = vld [vmem:[%s241_s19 + $0x20] sm:$0xff] (%p37_p5)  ;;  %255 = vst [vmem:[%s238_s20] sm:$0xff] (%p37_p5), %v254_v0  ;;  %257 = vst [vmem:[%s238_s20 + $0x8] sm:$0xff] (%p37_p5), %v256_v1  ;;  %v260_v3 = vld [vmem:[%s241_s19 + $0x28] sm:$0xff] (%p37_p5) }
  0x18   : > { %259 = vst [vmem:[%s238_s20 + $0x10] sm:$0xff] %v258_v2  ;;  %261 = vst [vmem:[%s238_s20 + $0x18] sm:$0xff] %v260_v3 }
  0x19 PF: > { %p2720_p10 = scmp.ge.s32.totalorder %s2976_s29, 1  ;;  %p266_p11 = scmp.lt.s32.totalorder %s2976_s29, 3 }
  0x1b   : > { %p267_p12 = pnand %p2720_p10, %p266_p11 }
  0x1d   : > { %270 = sbr.rel (%p267_p12) target bundleno = 680 (0x2a8), region = 67 }
  0x22   : > { %v504_v4 = vld [vmem:[%s4597_s3 + $0x10] sm:$0xff]  ;;  %v502_v5 = vld [vmem:[%s4597_s3] sm:$0xff]  ;;  %v2978_v6 = vmov 0   ;;  %v505_v7 = vld [vmem:[%s4597_s3 + $0x18] sm:$0xff]  ;;  %v2979_v9 = vmov 0.0   ;;  %s3108_s22 = sand.u32 1, %s2968_s27  }
  0x23   : > { %2903 = vset.pattern.permute.xlu1 %v2978_v6  ;;  %2902 = vset.pattern.permute.xlu0 %v2978_v6  ;;  %v503_v8 = vld [vmem:[%s4597_s3 + $0x8] sm:$0xff]  ;;  %v506_v11 = vld [vmem:[%s4597_s3 + $0x20] sm:$0xff]  ;;  %v509_v12 = vld [vmem:[%s4597_s3 + $0x38] sm:$0xff]  ;;  %s2721_s23 = sshll.u32 %s3108_s22, 5  ;;  %vm950_vm0 = vcmask 130048   ;;  %s2722_s15 = sshll.u32 %s3108_s22, 1 }
  0x24   : > { %578 = vperm.xlu1 %2903, %v504_v4   ;;  %568 = vperm.xlu0 %2902, %v502_v5   ;;  %v507_v10 = vld [vmem:[%s4597_s3 + $0x28] sm:$0xff]  ;;  %v508_v13 = vld [vmem:[%s4597_s3 + $0x30] sm:$0xff]  ;;  %v510_v15 = vld [vmem:[%s4597_s3 + $0x40] sm:$0xff]  ;;  %s3123_s17 = scalar_lea.vmem [#allocation3], %s2721_s23  ;;  %s2859_s16 = sshll.u32 %s2713_s6, 5 }
  0x25   : > { %1912 = vmatprep.mubr.f32.mxu1 %v2979_v9  ;;  %1207 = vmatprep.mubr.f32.mxu0 %v2979_v9  ;;  %v511_v14 = vld [vmem:[%s4597_s3 + $0x48] sm:$0xff]  ;;  %v513_v16 = vld [vmem:[%s4597_s3 + $0x58] sm:$0xff]  ;;  %v512_v17 = vld [vmem:[%s4597_s3 + $0x50] sm:$0xff]  ;;  %s303_s18 = scalar_lea.vmem [#allocation4], %s2722_s15  ;;  %s2647_s23 = scalar_lea.hbm %s4601_s7, %s2859_s16 }
  0x26   : > { %v309_v18 = vld [vmem:[%s3123_s17 + $0x18] sm:$0xff]  ;;  %v308_v19 = vld [vmem:[%s3123_s17 + $0x10] sm:$0xff]  ;;  %v307_v20 = vld [vmem:[%s3123_s17 + $0x8] sm:$0xff]  ;;  %s2649_s19 = sshll.u32 %s303_s18, 4  ;;  %s2635_s24 = scalar_lea.sflag [#allocation5], %s3108_s22  ;;  %s2650_s19 = int_to_ptr.vmem [resolvable:$true] %s2649_s19 }
  0x27   : > { %1876 = vmatprep.subr.mxu1 %v309_v18  ;;  %1171 = vmatprep.subr.mxu0 %v309_v18  ;;  %v515_v21 = vld [vmem:[%s4597_s3 + $0x68] sm:$0xff]  ;;  %v514_v22 = vld [vmem:[%s4597_s3 + $0x60] sm:$0xff]  ;;  %v517_v25 = vld [vmem:[%s4597_s3 + $0x78] sm:$0xff]  ;;  %s2916_s25 = scalar_lea.vmem %s2650_s19, 32  ;;  %s2981_s30 = smov [#allocation4]  }
  0x28   : > { %583 = vperm.xlu1 %2903, %v505_v7   ;;  %573 = vperm.xlu0 %2902, %v503_v8   ;;  %v306_v23 = vld [vmem:[%s3123_s17] sm:$0xff]  ;;  %v516_v26 = vld [vmem:[%s4597_s3 + $0x70] sm:$0xff]  ;;  %v1593_v27 = vld [vmem:[%s4598_s4 + $0x8] sm:$0xff]  ;;  %p2917_p13 = scmp.ne.s32.totalorder %s2650_s19, %s2916_s25  ;;  %s2920_s9 = sshll.u32 %s2981_s30, 4  ;;  %s2921_s9 = int_to_ptr.vmem [resolvable:$false] %s2920_s9 }
  0x29   : > { %1877 = vmatpush1.msra.mxu1 %v308_v19  ;;  %1172 = vmatpush1.msra.mxu0 %v308_v19  ;;  %v1592_v24 = vld [vmem:[%s4598_s4] sm:$0xff]  ;;  %v519_v28 = vld [vmem:[%s4597_s3 + $0x88] sm:$0xff]  ;;  %v1594_v30 = vld [vmem:[%s4598_s4 + $0x10] sm:$0xff]  ;;  %s2922_s6 = scalar_lea.vmem %s2921_s9, 64  ;;  %p2923_p2 = scmp.lt.s32.totalorder %s2650_s19, %s2921_s9 }
  0x2a   : > { %1878 = vmatprep.subr.mxu1 %v307_v20  ;;  %1173 = vmatprep.subr.mxu0 %v307_v20  ;;  %v518_v29 = vld [vmem:[%s4597_s3 + $0x80] sm:$0xff]  ;;  %v521_v31 = vld [vmem:[%s4597_s3 + $0x98] sm:$0xff]  ;;  %v520_v32 = vld [vmem:[%s4597_s3 + $0x90] sm:$0xff]  ;;  %p2918_p0 = pnand %p2917_p13, %p3063_p6  ;;  %p2924_p3 = scmp.lt.s32.totalorder %s2922_s6, %s2916_s25 }
  0x2b   : > { %1879 = vmatpush1.msra.mxu1 %v306_v23  ;;  %1174 = vmatpush1.msra.mxu0 %v306_v23  ;;  %v1595_v33 = vld [vmem:[%s4598_s4 + $0x18] sm:$0xff]  ;;  %v523_v34 = vld [vmem:[%s4597_s3 + $0xa8] sm:$0xff]  ;;  %v522_v35 = vld [vmem:[%s4597_s3 + $0xa0] sm:$0xff] }
  0x2c   : > { %593 = vperm.xlu1 %2903, %v507_v10   ;;  %588 = vperm.xlu0 %2902, %v506_v11   ;;  %v1596_v36 = vld [vmem:[%s4598_s4 + $0x20] sm:$0xff]  ;;  %v525_v37 = vld [vmem:[%s4597_s3 + $0xb8] sm:$0xff]  ;;  %v524_v38 = vld [vmem:[%s4597_s3 + $0xb0] sm:$0xff]  ;;  %p2919_p1 = pneg %p2918_p0  ;;  %p2925_p4 = por %p2924_p3, %p2923_p2 }
  0x2d   : > { %2787 = vmatmul.mubr.msk.f32.vlgmr.msra.gmra.mxu1 %vm950_vm0, %v1592_v24  ;;  %v1597_v39 = vld [vmem:[%s4598_s4 + $0x28] sm:$0xff]  ;;  %v526_v41 = vld [vmem:[%s4597_s3 + $0xc0] sm:$0xff]  ;;  %v1598_v42 = vld [vmem:[%s4598_s4 + $0x30] sm:$0xff] }
  0x2e   : > { %1918 = vmatprep.mubr.f32.mxu1 %v2979_v9  ;;  %v527_v40 = vld [vmem:[%s4597_s3 + $0xc8] sm:$0xff]  ;;  %v529_v43 = vld [vmem:[%s4597_s3 + $0xd8] sm:$0xff]  ;;  %v528_v44 = vld [vmem:[%s4597_s3 + $0xd0] sm:$0xff]  ;;  %p2926_p5 = pnand %p2925_p4, %p2919_p1 }
  0x2f   : > { %v1599_v45 = vld [vmem:[%s4598_s4 + $0x38] sm:$0xff]  ;;  %v531_v46 = vld [vmem:[%s4597_s3 + $0xe8] sm:$0xff]  ;;  %v530_v47 = vld [vmem:[%s4597_s3 + $0xe0] sm:$0xff] }
  0x30   : > { %603 = vperm.xlu1 %2903, %v509_v12   ;;  %598 = vperm.xlu0 %2902, %v508_v13   ;;  %v1600_v48 = vld [vmem:[%s4598_s4 + $0x40] sm:$0xff]  ;;  %v533_v49 = vld [vmem:[%s4597_s3 + $0xf8] sm:$0xff]  ;;  %v532_v50 = vld [vmem:[%s4597_s3 + $0xf0] sm:$0xff] }
  0x31   : > { %2788 = vmatmul.mubr.msk.f32.gmra.mxu1 %vm950_vm0, %v1593_v27  ;;  %v1601_v51 = vld [vmem:[%s4598_s4 + $0x48] sm:$0xff]  ;;  %v534_v53 = vld [vmem:[%s4597_s3 + $0x100] sm:$0xff]  ;;  %v1602_v54 = vld [vmem:[%s4598_s4 + $0x50] sm:$0xff] }
  0x32   : > { %1924 = vmatprep.mubr.f32.mxu1 %v2979_v9  ;;  %v535_v52 = vld [vmem:[%s4597_s3 + $0x108] sm:$0xff]  ;;  %v537_v55 = vld [vmem:[%s4597_s3 + $0x118] sm:$0xff]  ;;  %v536_v56 = vld [vmem:[%s4597_s3 + $0x110] sm:$0xff] }
  0x33   : > { %v1603_v57 = vld [vmem:[%s4598_s4 + $0x58] sm:$0xff]  ;;  %v539_v58 = vld [vmem:[%s4597_s3 + $0x128] sm:$0xff]  ;;  %v538_v59 = vld [vmem:[%s4597_s3 + $0x120] sm:$0xff] }
  0x34   : > { %613 = vperm.xlu1 %2903, %v511_v14   ;;  %608 = vperm.xlu0 %2902, %v510_v15   ;;  %v1604_v60 = vld [vmem:[%s4598_s4 + $0x60] sm:$0xff]  ;;  %v541_v61 = vld [vmem:[%s4597_s3 + $0x138] sm:$0xff]  ;;  %v540_v62 = vld [vmem:[%s4597_s3 + $0x130] sm:$0xff] }
  0x35   : > { %2789 = vmatmul.mubr.msk.f32.gmra.mxu1 %vm950_vm0, %v1594_v30  ;;  %v1605_v63 = vld [vmem:[%s4598_s4 + $0x68] sm:$0xff]  ;;  %v542_v1 = vld [vmem:[%s4597_s3 + $0x140] sm:$0xff]  ;;  %v1606_v2 = vld [vmem:[%s4598_s4 + $0x70] sm:$0xff] }
  0x36   : > { %1930 = vmatprep.mubr.f32.mxu1 %v2979_v9  ;;  %v543_v0 = vld [vmem:[%s4597_s3 + $0x148] sm:$0xff]  ;;  %v545_v3 = vld [vmem:[%s4597_s3 + $0x158] sm:$0xff]  ;;  %v544_v4 = vld [vmem:[%s4597_s3 + $0x150] sm:$0xff] }
  0x37   : > { %v1607_v5 = vld [vmem:[%s4598_s4 + $0x78] sm:$0xff]  ;;  %v547_v6 = vld [vmem:[%s4597_s3 + $0x168] sm:$0xff]  ;;  %v546_v7 = vld [vmem:[%s4597_s3 + $0x160] sm:$0xff] }
  0x38   : > { %623 = vperm.xlu1 %2903, %v513_v16   ;;  %618 = vperm.xlu0 %2902, %v512_v17   ;;  %v1608_v8 = vld [vmem:[%s4598_s4 + $0x80] sm:$0xff]  ;;  %v549_v10 = vld [vmem:[%s4597_s3 + $0x178] sm:$0xff]  ;;  %v548_v11 = vld [vmem:[%s4597_s3 + $0x170] sm:$0xff] }
  0x39   : > { %2790 = vmatmul.mubr.msk.f32.gmra.mxu1 %vm950_vm0, %v1595_v33  ;;  %v1609_v12 = vld [vmem:[%s4598_s4 + $0x88] sm:$0xff]  ;;  %v550_v14 = vld [vmem:[%s4597_s3 + $0x180] sm:$0xff]  ;;  %v1610_v15 = vld [vmem:[%s4598_s4 + $0x90] sm:$0xff] }
  0x3a   : > { %1936 = vmatprep.mubr.f32.mxu1 %v2979_v9  ;;  %v551_v13 = vld [vmem:[%s4597_s3 + $0x188] sm:$0xff]  ;;  %v553_v16 = vld [vmem:[%s4597_s3 + $0x198] sm:$0xff]  ;;  %v552_v17 = vld [vmem:[%s4597_s3 + $0x190] sm:$0xff] }
  0x3b   : > { %v1611_v18 = vld [vmem:[%s4598_s4 + $0x98] sm:$0xff]  ;;  %v555_v19 = vld [vmem:[%s4597_s3 + $0x1a8] sm:$0xff]  ;;  %v554_v20 = vld [vmem:[%s4597_s3 + $0x1a0] sm:$0xff] }
  0x3c   : > { %633 = vperm.xlu1 %2903, %v515_v21   ;;  %628 = vperm.xlu0 %2902, %v514_v22   ;;  %v1612_v21 = vld [vmem:[%s4598_s4 + $0xa0] sm:$0xff]  ;;  %v557_v22 = vld [vmem:[%s4597_s3 + $0x1b8] sm:$0xff]  ;;  %v556_v23 = vld [vmem:[%s4597_s3 + $0x1b0] sm:$0xff] }
  0x3d   : > { %2791 = vmatmul.mubr.msk.f32.gmra.mxu1 %vm950_vm0, %v1596_v36  ;;  %v1613_v24 = vld [vmem:[%s4598_s4 + $0xa8] sm:$0xff]  ;;  %v1614_v27 = vld [vmem:[%s4598_s4 + $0xb0] sm:$0xff]  ;;  %v1615_v30 = vld [vmem:[%s4598_s4 + $0xb8] sm:$0xff] }
  0x3e   : > { %1942 = vmatprep.mubr.f32.mxu1 %v2979_v9  ;;  %v310_v33 = vld [vmem:[%s4595_s1] sm:$0xff] }
  0x40   : > { %643 = vperm.xlu1 %2903, %v517_v25   ;;  %638 = vperm.xlu0 %2902, %v516_v26   ;;  %v559_v25 = vld [vmem:[%s4597_s3 + $0x1c8] sm:$0xff]  ;;  %v558_v26 = vld [vmem:[%s4597_s3 + $0x1c0] sm:$0xff] }
  0x41   : > { %2792 = vmatmul.mubr.msk.f32.gmra.mxu1 %vm950_vm0, %v1597_v39  ;;  %v311_v39 = vld [vmem:[%s4595_s1 + $0x8] sm:$0xff] }
  0x42   : > { %1948 = vmatprep.mubr.f32.mxu1 %v2979_v9 }
  0x44   : > { %653 = vperm.xlu1 %2903, %v519_v28   ;;  %648 = vperm.xlu0 %2902, %v518_v29   ;;  %v561_v28 = vld [vmem:[%s4597_s3 + $0x1d8] sm:$0xff]  ;;  %v560_v29 = vld [vmem:[%s4597_s3 + $0x1d0] sm:$0xff] }
  0x45   : > { %2793 = vmatmul.mubr.msk.f32.gmra.mxu1 %vm950_vm0, %v1598_v42  ;;  %v312_v42 = vld [vmem:[%s4595_s1 + $0x10] sm:$0xff] }
  0x46   : > { %1954 = vmatprep.mubr.f32.mxu1 %v2979_v9 }
  0x48   : > { %663 = vperm.xlu1 %2903, %v521_v31   ;;  %658 = vperm.xlu0 %2902, %v520_v32   ;;  %v563_v31 = vld [vmem:[%s4597_s3 + $0x1e8] sm:$0xff]  ;;  %v562_v32 = vld [vmem:[%s4597_s3 + $0x1e0] sm:$0xff] }
  0x49   : > { %2794 = vmatmul.mubr.msk.f32.gmra.mxu1 %vm950_vm0, %v1599_v45 }
  0x4a   : > { %1960 = vmatprep.mubr.f32.mxu1 %v2979_v9 }
  0x4c   : > { %673 = vperm.xlu1 %2903, %v523_v34   ;;  %668 = vperm.xlu0 %2902, %v522_v35   ;;  %v374_v34 = vld [vmem:[%s4596_s2] sm:$0xff] }
  0x4d   : > { %2795 = vmatmul.mubr.msk.f32.gmra.mxu1 %vm950_vm0, %v1600_v48  ;;  %v1616_v35 = vld [vmem:[%s4598_s4 + $0xc0] sm:$0xff]  ;;  %v438_v36 = vmul.f32 %v374_v34, %v310_v33  ;;  %v320_v33 = vld [vmem:[%s4595_s1 + $0x50] sm:$0xff] }
  0x4e   : > { %1966 = vmatprep.mubr.f32.mxu1 %v2979_v9  ;;  %v2563_v48 = vld [vmem:[%s4599_s5] sm:$0xff]  ;;  %v384_v34 = vld [vmem:[%s4596_s2 + $0x50] sm:$0xff] }
  0x50   : > { %683 = vperm.xlu1 %2903, %v525_v37   ;;  %678 = vperm.xlu0 %2902, %v524_v38   ;;  %v565_v37 = vld [vmem:[%s4597_s3 + $0x1f8] sm:$0xff]  ;;  %v564_v38 = vld [vmem:[%s4597_s3 + $0x1f0] sm:$0xff] }
  0x51   : > { %2796 = vmatmul.mubr.msk.f32.gmra.mxu1 %vm950_vm0, %v1601_v51 }
  0x52   : > { %1972 = vmatprep.mubr.f32.mxu1 %v2979_v9 }
  0x54   : > { %693 = vperm.xlu1 %2903, %v527_v40   ;;  %688 = vperm.xlu0 %2902, %v526_v41   ;;  %v375_v40 = vld [vmem:[%s4596_s2 + $0x8] sm:$0xff] }
  0x55   : > { %2797 = vmatmul.mubr.msk.f32.gmra.mxu1 %vm950_vm0, %v1602_v54  ;;  %v1617_v41 = vld [vmem:[%s4598_s4 + $0xc8] sm:$0xff]  ;;  %v313_v54 = vld [vmem:[%s4595_s1 + $0x18] sm:$0xff] }
  0x56   : > { %1978 = vmatprep.mubr.f32.mxu1 %v2979_v9 }
  0x58   : > { %703 = vperm.xlu1 %2903, %v529_v43   ;;  %698 = vperm.xlu0 %2902, %v528_v44   ;;  %v376_v43 = vld [vmem:[%s4596_s2 + $0x10] sm:$0xff] }
  0x59   : > { %2798 = vmatmul.mubr.msk.f32.gmra.mxu1 %vm950_vm0, %v1603_v57  ;;  %v1619_v57 = vld [vmem:[%s4598_s4 + $0xd8] sm:$0xff] }
  0x5a   : > { %1984 = vmatprep.mubr.f32.mxu1 %v2979_v9 }
  0x5c   : > { %713 = vperm.xlu1 %2903, %v531_v46   ;;  %708 = vperm.xlu0 %2902, %v530_v47   ;;  %v439_v46 = vmul.f32 %v375_v40, %v311_v39  ;;  %v2564_v47 = vld [vmem:[%s4599_s5 + $0x8] sm:$0xff]  ;;  %v385_v39 = vld [vmem:[%s4596_s2 + $0x58] sm:$0xff] }
  0x5d   : > { %2799 = vmatmul.mubr.msk.f32.gmra.mxu1 %vm950_vm0, %v1604_v60  ;;  %v378_v60 = vld [vmem:[%s4596_s2 + $0x20] sm:$0xff] }
  0x5e   : > { %1990 = vmatprep.mubr.f32.mxu1 %v2979_v9 }
  0x60   : > { %723 = vperm.xlu1 %2903, %v533_v49   ;;  %718 = vperm.xlu0 %2902, %v532_v50   ;;  %v440_v49 = vmul.f32 %v376_v43, %v312_v42  ;;  %v1618_v50 = vld [vmem:[%s4598_s4 + $0xd0] sm:$0xff] }
  0x61   : > { %2800 = vmatmul.mubr.msk.f32.gmra.mxu1 %vm950_vm0, %v1605_v63 }
  0x62   : > { %1996 = vmatprep.mubr.f32.mxu1 %v2979_v9 }
  0x64   : > { %733 = vperm.xlu1 %2903, %v535_v52   ;;  %728 = vperm.xlu0 %2902, %v534_v53  }
  0x65   : > { %2801 = vmatmul.mubr.msk.f32.gmra.mxu1 %vm950_vm0, %v1606_v2  ;;  %v379_v2 = vld [vmem:[%s4596_s2 + $0x28] sm:$0xff] }
  0x66   : > { %2002 = vmatprep.mubr.f32.mxu1 %v2979_v9 }
  0x68   : > { %743 = vperm.xlu1 %2903, %v537_v55   ;;  %738 = vperm.xlu0 %2902, %v536_v56   ;;  %v377_v55 = vld [vmem:[%s4596_s2 + $0x18] sm:$0xff] }
  0x69   : > { %2802 = vmatmul.mubr.msk.f32.gmra.mxu1 %vm950_vm0, %v1607_v5 }
  0x6a   : > { %2008 = vmatprep.mubr.f32.mxu1 %v2979_v9 }
  0x6c   : > { %753 = vperm.xlu1 %2903, %v539_v58   ;;  %748 = vperm.xlu0 %2902, %v538_v59   ;;  %v441_v58 = vmul.f32 %v377_v55, %v313_v54  ;;  %v314_v59 = vld [vmem:[%s4595_s1 + $0x20] sm:$0xff] }
  0x6d   : > { %2803 = vmatmul.mubr.msk.f32.gmra.mxu1 %vm950_vm0, %v1608_v8  ;;  %v316_v8 = vld [vmem:[%s4595_s1 + $0x30] sm:$0xff] }
  0x6e   : > { %2014 = vmatprep.mubr.f32.mxu1 %v2979_v9 }
  0x70   : > { %763 = vperm.xlu1 %2903, %v541_v61   ;;  %758 = vperm.xlu0 %2902, %v540_v62   ;;  %v1620_v61 = vld [vmem:[%s4598_s4 + $0xe0] sm:$0xff] }
  0x71   : > { %2804 = vmatmul.mubr.msk.f32.gmra.mxu1 %vm950_vm0, %v1609_v12 }
  0x72   : > { %2020 = vmatprep.mubr.f32.mxu1 %v2979_v9 }
  0x74   : > { %773 = vperm.xlu1 %2903, %v543_v0   ;;  %768 = vperm.xlu0 %2902, %v542_v1   ;;  %v442_v0 = vmul.f32 %v378_v60, %v314_v59  ;;  %v315_v1 = vld [vmem:[%s4595_s1 + $0x28] sm:$0xff]  ;;  %v1630_v59 = vld [vmem:[%s4598_s4 + $0x130] sm:$0xff] }
  0x75   : > { %2805 = vmatmul.mubr.msk.f32.gmra.mxu1 %vm950_vm0, %v1610_v15  ;;  %v443_v5 = vmul.f32 %v379_v2, %v315_v1  ;;  %v381_v15 = vld [vmem:[%s4596_s2 + $0x38] sm:$0xff] }
  0x76   : > { %2026 = vmatprep.mubr.f32.mxu1 %v2979_v9  ;;  %v1631_v1 = vld [vmem:[%s4598_s4 + $0x138] sm:$0xff] }
  0x78   : > { %783 = vperm.xlu1 %2903, %v545_v3   ;;  %778 = vperm.xlu0 %2902, %v544_v4   ;;  %v1621_v4 = vld [vmem:[%s4598_s4 + $0xe8] sm:$0xff] }
  0x79   : > { %2806 = vmatmul.mubr.msk.f32.gmra.mxu1 %vm950_vm0, %v1611_v18 }
  0x7a   : > { %2032 = vmatprep.mubr.f32.mxu1 %v2979_v9 }
  0x7c   : > { %793 = vperm.xlu1 %2903, %v547_v6   ;;  %788 = vperm.xlu0 %2902, %v546_v7  }
  0x7d   : > { %2807 = vmatmul.mubr.msk.f32.gmra.mxu1 %vm950_vm0, %v1612_v21  ;;  %v318_v21 = vld [vmem:[%s4595_s1 + $0x40] sm:$0xff] }
  0x7e   : > { %2038 = vmatprep.mubr.f32.mxu1 %v2979_v9 }
  0x80   : > { %803 = vperm.xlu1 %2903, %v549_v10   ;;  %798 = vperm.xlu0 %2902, %v548_v11   ;;  %v380_v10 = vld [vmem:[%s4596_s2 + $0x30] sm:$0xff] }
  0x81   : > { %2808 = vmatmul.mubr.msk.f32.gmra.mxu1 %vm950_vm0, %v1613_v24  ;;  %v1622_v11 = vld [vmem:[%s4598_s4 + $0xf0] sm:$0xff] }
  0x82   : > { %2044 = vmatprep.mubr.f32.mxu1 %v2979_v9 }
  0x84   : > { %813 = vperm.xlu1 %2903, %v551_v13   ;;  %808 = vperm.xlu0 %2902, %v550_v14   ;;  %v444_v13 = vmul.f32 %v380_v10, %v316_v8  ;;  %v317_v14 = vld [vmem:[%s4595_s1 + $0x38] sm:$0xff] }
  0x85   : > { %2809 = vmatmul.mubr.msk.f32.gmra.mxu1 %vm950_vm0, %v1614_v27  ;;  %v445_v18 = vmul.f32 %v381_v15, %v317_v14  ;;  %v383_v27 = vld [vmem:[%s4596_s2 + $0x48] sm:$0xff] }
  0x86   : > { %2050 = vmatprep.mubr.f32.mxu1 %v2979_v9  ;;  %v1633_v14 = vld [vmem:[%s4598_s4 + $0x148] sm:$0xff] }
  0x88   : > { %823 = vperm.xlu1 %2903, %v553_v16   ;;  %818 = vperm.xlu0 %2902, %v552_v17   ;;  %v1623_v17 = vld [vmem:[%s4598_s4 + $0xf8] sm:$0xff] }
  0x89   : > { %2810 = vmatmul.mubr.msk.f32.gmra.mxu1 %vm950_vm0, %v1615_v30 }
  0x8a   : > { %2056 = vmatprep.mubr.f32.mxu1 %v2979_v9 }
  0x8c   : > { %833 = vperm.xlu1 %2903, %v555_v19   ;;  %828 = vperm.xlu0 %2902, %v554_v20  }
  0x8d   : > { %2811 = vmatmul.mubr.msk.f32.gmra.mxu1 %vm950_vm0, %v1616_v35  ;;  %v1626_v35 = vld [vmem:[%s4598_s4 + $0x110] sm:$0xff] }
  0x8e   : > { %2062 = vmatprep.mubr.f32.mxu1 %v2979_v9 }
  0x90   : > { %843 = vperm.xlu1 %2903, %v557_v22   ;;  %838 = vperm.xlu0 %2902, %v556_v23   ;;  %v382_v22 = vld [vmem:[%s4596_s2 + $0x40] sm:$0xff] }
  0x91   : > { %2812 = vmatmul.mubr.msk.f32.gmra.mxu1 %vm950_vm0, %v1617_v41  ;;  %v1624_v23 = vld [vmem:[%s4598_s4 + $0x100] sm:$0xff]  ;;  %v1627_v41 = vld [vmem:[%s4598_s4 + $0x118] sm:$0xff] }
  0x92   : > { %2068 = vmatprep.mubr.f32.mxu1 %v2979_v9 }
  0x94   : > { %853 = vperm.xlu1 %2903, %v559_v25   ;;  %848 = vperm.xlu0 %2902, %v558_v26   ;;  %v446_v25 = vmul.f32 %v382_v22, %v318_v21  ;;  %v319_v26 = vld [vmem:[%s4595_s1 + $0x48] sm:$0xff] }
  0x95   : > { %2813 = vmatmul.mubr.msk.f32.gmra.mxu1 %vm950_vm0, %v1618_v50  ;;  %v447_v30 = vmul.f32 %v383_v27, %v319_v26  ;;  %v323_v50 = vld [vmem:[%s4595_s1 + $0x68] sm:$0xff]  ;;  %v1635_v26 = vld [vmem:[%s4598_s4 + $0x158] sm:$0xff] }
  0x96   : > { %2074 = vmatprep.mubr.f32.mxu1 %v2979_v9 }
  0x98   : > { %863 = vperm.xlu1 %2903, %v561_v28   ;;  %858 = vperm.xlu0 %2902, %v560_v29   ;;  %v1625_v29 = vld [vmem:[%s4598_s4 + $0x108] sm:$0xff] }
  0x99   : > { %2814 = vmatmul.mubr.msk.f32.gmra.mxu1 %vm950_vm0, %v1619_v57  ;;  %v324_v57 = vld [vmem:[%s4595_s1 + $0x70] sm:$0xff] }
  0x9a   : > { %2080 = vmatprep.mubr.f32.mxu1 %v2979_v9 }
  0x9c   : > { %873 = vperm.xlu1 %2903, %v563_v31   ;;  %868 = vperm.xlu0 %2902, %v562_v32  }
  0x9d   : > { %2815 = vmatmul.mubr.msk.f32.gmra.mxu1 %vm950_vm0, %v1620_v61 }
  0x9e   : > { %2086 = vmatprep.mubr.f32.mxu1 %v2979_v9 }
  0x9f   : > { %v569_v44 = vpop.permute.xlu0 %568  ;;  %v579_v53 = vpop.permute.xlu1 %578 }
  0xa0   : > { %v886_v45 = vmul.f32 %v569_v44, %v438_v36  ;;  %883 = vperm.xlu1 %2903, %v565_v37   ;;  %878 = vperm.xlu0 %2902, %v564_v38   ;;  %v888_v56 = vmul.f32 %v579_v53, %v440_v49  ;;  %v448_v37 = vmul.f32 %v384_v34, %v320_v33  ;;  %v321_v38 = vld [vmem:[%s4595_s1 + $0x58] sm:$0xff]  ;;  %v1629_v53 = vld [vmem:[%s4598_s4 + $0x128] sm:$0xff] }
  0xa1   : > { %2816 = vmatmul.mubr.msk.f32.gmra.mxu1 %vm950_vm0, %v1621_v4  ;;  %v449_v42 = vmul.f32 %v385_v39, %v321_v38  ;;  %v1637_v38 = vld [vmem:[%s4598_s4 + $0x168] sm:$0xff] }
  0xa2   : > { %2723 = vmatmul.mubr.msk.f32.vlgmr.msra.gmra.mxu0 %vm950_vm0, %v886_v45  ;;  %2092 = vmatprep.mubr.f32.mxu1 %v2979_v9  ;;  %v322_v45 = vld [vmem:[%s4595_s1 + $0x60] sm:$0xff] }
  0xa3   : > { %v574_v51 = vpop.permute.xlu0 %573  ;;  %1213 = vmatprep.mubr.f32.mxu0 %v2979_v9  ;;  %v584_v62 = vpop.permute.xlu1 %583 }
  0xa4   : > { %v887_v52 = vmul.f32 %v574_v51, %v439_v46  ;;  %2572 = vperm.xlu1 %2903, %v2564_v47   ;;  %2567 = vperm.xlu0 %2902, %v2563_v48   ;;  %v889_v63 = vmul.f32 %v584_v62, %v441_v58  ;;  %v386_v46 = vld [vmem:[%s4596_s2 + $0x60] sm:$0xff]  ;;  %v387_v51 = vld [vmem:[%s4596_s2 + $0x68] sm:$0xff]  ;;  %v388_v58 = vld [vmem:[%s4596_s2 + $0x70] sm:$0xff] }
  0xa5   : > { %2817 = vmatmul.mubr.msk.f32.gmra.mxu1 %vm950_vm0, %v1622_v11  ;;  %v1628_v47 = vld [vmem:[%s4598_s4 + $0x120] sm:$0xff]  ;;  %v450_v49 = vmul.f32 %v386_v46, %v322_v45  ;;  %v451_v54 = vmul.f32 %v387_v51, %v323_v50  ;;  %v452_v61 = vmul.f32 %v388_v58, %v324_v57  ;;  %v325_v62 = vld [vmem:[%s4595_s1 + $0x78] sm:$0xff]  ;;  %v327_v11 = vld [vmem:[%s4595_s1 + $0x88] sm:$0xff] }
  0xa6   : > { %2724 = vmatmul.mubr.msk.f32.gmra.mxu0 %vm950_vm0, %v887_v52  ;;  %2098 = vmatprep.mubr.f32.mxu1 %v2979_v9  ;;  %v1639_v50 = vld [vmem:[%s4598_s4 + $0x178] sm:$0xff] }
  0xa7   : > { %1219 = vmatprep.mubr.f32.mxu0 %v2979_v9  ;;  %v589_v3 = vpop.permute.xlu0 %588  ;;  %v594_v7 = vpop.permute.xlu1 %593 }
  0xa8   : > { %v890_v6 = vmul.f32 %v589_v3, %v442_v0  ;;  %v891_v12 = vmul.f32 %v594_v7, %v443_v5  ;;  %v326_v5 = vld [vmem:[%s4595_s1 + $0x80] sm:$0xff] }
  0xa9   : > { %2818 = vmatmul.mubr.msk.f32.gmra.mxu1 %vm950_vm0, %v1623_v17  ;;  %v1632_v7 = vld [vmem:[%s4598_s4 + $0x140] sm:$0xff] }
  0xaa   : > { %2725 = vmatmul.mubr.msk.f32.gmra.mxu0 %vm950_vm0, %v888_v56  ;;  %2104 = vmatprep.mubr.f32.mxu1 %v2979_v9 }
  0xab   : > { %1225 = vmatprep.mubr.f32.mxu0 %v2979_v9  ;;  %v599_v16 = vpop.permute.xlu0 %598  ;;  %v604_v20 = vpop.permute.xlu1 %603 }
  0xac   : > { %v892_v19 = vmul.f32 %v599_v16, %v444_v13  ;;  %v893_v24 = vmul.f32 %v604_v20, %v445_v18  ;;  %v328_v18 = vld [vmem:[%s4595_s1 + $0x90] sm:$0xff] }
  0xad   : > { %2819 = vmatmul.mubr.msk.f32.gmra.mxu1 %vm950_vm0, %v1624_v23  ;;  %v1634_v20 = vld [vmem:[%s4598_s4 + $0x150] sm:$0xff]  ;;  %v329_v23 = vld [vmem:[%s4595_s1 + $0x98] sm:$0xff] }
  0xae   : > { %2726 = vmatmul.mubr.msk.f32.gmra.mxu0 %vm950_vm0, %v889_v63  ;;  %2110 = vmatprep.mubr.f32.mxu1 %v2979_v9  ;;  %v389_v63 = vld [vmem:[%s4596_s2 + $0x78] sm:$0xff] }
  0xaf   : > { %1231 = vmatprep.mubr.f32.mxu0 %v2979_v9  ;;  %v609_v28 = vpop.permute.xlu0 %608  ;;  %v614_v32 = vpop.permute.xlu1 %613  ;;  %v453_v2 = vmul.f32 %v389_v63, %v325_v62  ;;  %v1641_v63 = vld [vmem:[%s4598_s4 + $0x188] sm:$0xff] }
  0xb0   : > { %v894_v31 = vmul.f32 %v609_v28, %v446_v25  ;;  %v895_v36 = vmul.f32 %v614_v32, %v447_v30  ;;  %v330_v30 = vld [vmem:[%s4595_s1 + $0xa0] sm:$0xff] }
  0xb1   : > { %2820 = vmatmul.mubr.msk.f32.gmra.mxu1 %vm950_vm0, %v1625_v29  ;;  %v1636_v32 = vld [vmem:[%s4598_s4 + $0x160] sm:$0xff] }
  0xb2   : > { %2727 = vmatmul.mubr.msk.f32.gmra.mxu0 %vm950_vm0, %v890_v6  ;;  %2116 = vmatprep.mubr.f32.mxu1 %v2979_v9  ;;  %v390_v6 = vld [vmem:[%s4596_s2 + $0x80] sm:$0xff] }
  0xb3   : > { %1237 = vmatprep.mubr.f32.mxu0 %v2979_v9  ;;  %v619_v40 = vpop.permute.xlu0 %618  ;;  %v624_v44 = vpop.permute.xlu1 %623  ;;  %v454_v10 = vmul.f32 %v390_v6, %v326_v5  ;;  %v400_v5 = vld [vmem:[%s4596_s2 + $0xd0] sm:$0xff] }
  0xb4   : > { %v896_v43 = vmul.f32 %v619_v40, %v448_v37  ;;  %v897_v48 = vmul.f32 %v624_v44, %v449_v42  ;;  %v332_v42 = vld [vmem:[%s4595_s1 + $0xb0] sm:$0xff] }
  0xb5   : > { %2821 = vmatmul.mubr.msk.f32.gmra.mxu1 %vm950_vm0, %v1626_v35  ;;  %v331_v35 = vld [vmem:[%s4595_s1 + $0xa8] sm:$0xff]  ;;  %v1638_v44 = vld [vmem:[%s4598_s4 + $0x170] sm:$0xff] }
  0xb6   : > { %2728 = vmatmul.mubr.msk.f32.gmra.mxu0 %vm950_vm0, %v891_v12  ;;  %2122 = vmatprep.mubr.f32.mxu1 %v2979_v9  ;;  %v391_v12 = vld [vmem:[%s4596_s2 + $0x88] sm:$0xff] }
  0xb7   : > { %1243 = vmatprep.mubr.f32.mxu0 %v2979_v9  ;;  %v629_v52 = vpop.permute.xlu0 %628  ;;  %v634_v56 = vpop.permute.xlu1 %633  ;;  %v455_v15 = vmul.f32 %v391_v12, %v327_v11  ;;  %v337_v12 = vld [vmem:[%s4595_s1 + $0xd8] sm:$0xff] }
  0xb8   : > { %v898_v55 = vmul.f32 %v629_v52, %v450_v49  ;;  %v899_v60 = vmul.f32 %v634_v56, %v451_v54  ;;  %v334_v54 = vld [vmem:[%s4595_s1 + $0xc0] sm:$0xff] }
  0xb9   : > { %2822 = vmatmul.mubr.msk.f32.gmra.mxu1 %vm950_vm0, %v1627_v41  ;;  %v1640_v56 = vld [vmem:[%s4598_s4 + $0x180] sm:$0xff] }
  0xba   : > { %2729 = vmatmul.mubr.msk.f32.gmra.mxu0 %vm950_vm0, %v892_v19  ;;  %2128 = vmatprep.mubr.f32.mxu1 %v2979_v9  ;;  %v392_v19 = vld [vmem:[%s4596_s2 + $0x90] sm:$0xff] }
  0xbb   : > { %1249 = vmatprep.mubr.f32.mxu0 %v2979_v9  ;;  %v639_v0 = vpop.permute.xlu0 %638  ;;  %v644_v4 = vpop.permute.xlu1 %643  ;;  %v456_v22 = vmul.f32 %v392_v19, %v328_v18 }
  0xbc   : > { %v900_v3 = vmul.f32 %v639_v0, %v452_v61  ;;  %v901_v8 = vmul.f32 %v644_v4, %v453_v2  ;;  %v336_v4 = vld [vmem:[%s4595_s1 + $0xd0] sm:$0xff] }
  0xbd   : > { %2823 = vmatmul.mubr.msk.f32.gmra.mxu1 %vm950_vm0, %v1628_v47  ;;  %v333_v47 = vld [vmem:[%s4595_s1 + $0xb8] sm:$0xff] }
  0xbe   : > { %2730 = vmatmul.mubr.msk.f32.gmra.mxu0 %vm950_vm0, %v893_v24  ;;  %2134 = vmatprep.mubr.f32.mxu1 %v2979_v9  ;;  %v393_v24 = vld [vmem:[%s4596_s2 + $0x98] sm:$0xff] }
  0xbf   : > { %1255 = vmatprep.mubr.f32.mxu0 %v2979_v9  ;;  %v649_v13 = vpop.permute.xlu0 %648  ;;  %v654_v17 = vpop.permute.xlu1 %653  ;;  %v457_v27 = vmul.f32 %v393_v24, %v329_v23  ;;  %v1644_v24 = vld [vmem:[%s4598_s4 + $0x1a0] sm:$0xff] }
  0xc0   : > { %v902_v16 = vmul.f32 %v649_v13, %v454_v10  ;;  %v903_v21 = vmul.f32 %v654_v17, %v455_v15  ;;  %v464_v10 = vmul.f32 %v400_v5, %v336_v4  ;;  %v401_v13 = vld [vmem:[%s4596_s2 + $0xd8] sm:$0xff] }
  0xc1   : > { %2824 = vmatmul.mubr.msk.f32.gmra.mxu1 %vm950_vm0, %v1629_v53  ;;  %v465_v17 = vmul.f32 %v401_v13, %v337_v12  ;;  %v1650_v13 = vld [vmem:[%s4598_s4 + $0x1d0] sm:$0xff] }
  0xc2   : > { %2731 = vmatmul.mubr.msk.f32.gmra.mxu0 %vm950_vm0, %v894_v31  ;;  %2140 = vmatprep.mubr.f32.mxu1 %v2979_v9  ;;  %v394_v31 = vld [vmem:[%s4596_s2 + $0xa0] sm:$0xff] }
  0xc3   : > { %1261 = vmatprep.mubr.f32.mxu0 %v2979_v9  ;;  %v659_v25 = vpop.permute.xlu0 %658  ;;  %v664_v29 = vpop.permute.xlu1 %663  ;;  %v458_v34 = vmul.f32 %v394_v31, %v330_v30 }
  0xc4   : > { %v904_v28 = vmul.f32 %v659_v25, %v456_v22  ;;  %v905_v33 = vmul.f32 %v664_v29, %v457_v27  ;;  %v402_v22 = vld [vmem:[%s4596_s2 + $0xe0] sm:$0xff]  ;;  %v403_v29 = vld [vmem:[%s4596_s2 + $0xe8] sm:$0xff] }
  0xc5   : > { %2825 = vmatmul.mubr.msk.f32.gmra.mxu1 %vm950_vm0, %v1630_v59  ;;  %v335_v59 = vld [vmem:[%s4595_s1 + $0xc8] sm:$0xff] }
  0xc6   : > { %2732 = vmatmul.mubr.msk.f32.gmra.mxu0 %vm950_vm0, %v895_v36  ;;  %2146 = vmatprep.mubr.f32.mxu1 %v2979_v9  ;;  %v395_v36 = vld [vmem:[%s4596_s2 + $0xa8] sm:$0xff] }
  0xc7   : > { %1267 = vmatprep.mubr.f32.mxu0 %v2979_v9  ;;  %v669_v37 = vpop.permute.xlu0 %668  ;;  %v459_v39 = vmul.f32 %v395_v36, %v331_v35  ;;  %v674_v41 = vpop.permute.xlu1 %673 }
  0xc8   : > { %v906_v40 = vmul.f32 %v669_v37, %v458_v34  ;;  %v340_v37 = vld [vmem:[%s4595_s1 + $0xf0] sm:$0xff] }
  0xc9   : > { %2826 = vmatmul.mubr.msk.f32.gmra.mxu1 %vm950_vm0, %v1631_v1  ;;  %v907_v45 = vmul.f32 %v674_v41, %v459_v39 }
  0xca   : > { %2733 = vmatmul.mubr.msk.f32.gmra.mxu0 %vm950_vm0, %v896_v43  ;;  %2152 = vmatprep.mubr.f32.mxu1 %v2979_v9  ;;  %v396_v43 = vld [vmem:[%s4596_s2 + $0xb0] sm:$0xff] }
  0xcb   : > { %1273 = vmatprep.mubr.f32.mxu0 %v2979_v9  ;;  %v460_v46 = vmul.f32 %v396_v43, %v332_v42  ;;  %v679_v49 = vpop.permute.xlu0 %678  ;;  %v684_v53 = vpop.permute.xlu1 %683 }
  0xcd   : > { %2827 = vmatmul.mubr.msk.f32.gmra.mxu1 %vm950_vm0, %v1632_v7  ;;  %v908_v52 = vmul.f32 %v679_v49, %v460_v46  ;;  %v1642_v7 = vld [vmem:[%s4598_s4 + $0x190] sm:$0xff] }
  0xce   : > { %2734 = vmatmul.mubr.msk.f32.gmra.mxu0 %vm950_vm0, %v897_v48  ;;  %2158 = vmatprep.mubr.f32.mxu1 %v2979_v9  ;;  %v397_v48 = vld [vmem:[%s4596_s2 + $0xb8] sm:$0xff] }
  0xcf   : > { %1279 = vmatprep.mubr.f32.mxu0 %v2979_v9  ;;  %v461_v51 = vmul.f32 %v397_v48, %v333_v47  ;;  %v689_v61 = vpop.permute.xlu0 %688  ;;  %v1647_v48 = vld [vmem:[%s4598_s4 + $0x1b8] sm:$0xff] }
  0xd1   : > { %2828 = vmatmul.mubr.msk.f32.gmra.mxu1 %vm950_vm0, %v1633_v14  ;;  %v909_v57 = vmul.f32 %v684_v53, %v461_v51  ;;  %v342_v53 = vld [vmem:[%s4595_s1 + $0x100] sm:$0xff] }
  0xd2   : > { %2735 = vmatmul.mubr.msk.f32.gmra.mxu0 %vm950_vm0, %v898_v55  ;;  %2164 = vmatprep.mubr.f32.mxu1 %v2979_v9  ;;  %v398_v55 = vld [vmem:[%s4596_s2 + $0xc0] sm:$0xff] }
  0xd3   : > { %1285 = vmatprep.mubr.f32.mxu0 %v2979_v9  ;;  %v462_v58 = vmul.f32 %v398_v55, %v334_v54  ;;  %v699_v14 = vpop.permute.xlu0 %698  ;;  %v406_v54 = vld [vmem:[%s4596_s2 + $0x100] sm:$0xff] }
  0xd4   : > { %v912_v18 = vmul.f32 %v699_v14, %v464_v10  ;;  %v408_v10 = vld [vmem:[%s4596_s2 + $0x110] sm:$0xff] }
  0xd5   : > { %2829 = vmatmul.mubr.msk.f32.gmra.mxu1 %vm950_vm0, %v1634_v20  ;;  %v910_v1 = vmul.f32 %v689_v61, %v462_v58  ;;  %v470_v58 = vmul.f32 %v406_v54, %v342_v53  ;;  %v407_v61 = vld [vmem:[%s4596_s2 + $0x108] sm:$0xff]  ;;  %v412_v53 = vld [vmem:[%s4596_s2 + $0x130] sm:$0xff] }
  0xd6   : > { %2736 = vmatmul.mubr.msk.f32.gmra.mxu0 %vm950_vm0, %v899_v60  ;;  %2170 = vmatprep.mubr.f32.mxu1 %v2979_v9  ;;  %v399_v60 = vld [vmem:[%s4596_s2 + $0xc8] sm:$0xff] }
  0xd7   : > { %1291 = vmatprep.mubr.f32.mxu0 %v2979_v9  ;;  %v463_v0 = vmul.f32 %v399_v60, %v335_v59  ;;  %v709_v30 = vpop.permute.xlu0 %708  ;;  %v343_v60 = vld [vmem:[%s4595_s1 + $0x108] sm:$0xff] }
  0xd9   : > { %2830 = vmatmul.mubr.msk.f32.gmra.mxu1 %vm950_vm0, %v1635_v26 }
  0xda   : > { %2737 = vmatmul.mubr.msk.f32.gmra.mxu0 %vm950_vm0, %v900_v3  ;;  %2176 = vmatprep.mubr.f32.mxu1 %v2979_v9  ;;  %v694_v3 = vpop.permute.xlu1 %693 }
  0xdb   : > { %1297 = vmatprep.mubr.f32.mxu0 %v2979_v9  ;;  %v719_v46 = vpop.permute.xlu0 %718 }
  0xdd   : > { %2831 = vmatmul.mubr.msk.f32.gmra.mxu1 %vm950_vm0, %v1636_v32  ;;  %v1645_v32 = vld [vmem:[%s4598_s4 + $0x1a8] sm:$0xff] }
  0xde   : > { %2738 = vmatmul.mubr.msk.f32.gmra.mxu0 %vm950_vm0, %v901_v8  ;;  %2182 = vmatprep.mubr.f32.mxu1 %v2979_v9  ;;  %v911_v8 = vmul.f32 %v694_v3, %v463_v0  ;;  %v704_v20 = vpop.permute.xlu1 %703  ;;  %v471_v3 = vmul.f32 %v407_v61, %v343_v60  ;;  %v349_v61 = vld [vmem:[%s4595_s1 + $0x138] sm:$0xff] }
  0xdf   : > { %1303 = vmatprep.mubr.f32.mxu0 %v2979_v9  ;;  %v913_v25 = vmul.f32 %v704_v20, %v465_v17  ;;  %v409_v20 = vld [vmem:[%s4596_s2 + $0x118] sm:$0xff] }
  0xe1   : > { %2832 = vmatmul.mubr.msk.f32.gmra.mxu1 %vm950_vm0, %v1637_v38  ;;  %v404_v38 = vld [vmem:[%s4596_s2 + $0xf0] sm:$0xff] }
  0xe2   : > { %2739 = vmatmul.mubr.msk.f32.gmra.mxu0 %vm950_vm0, %v902_v16  ;;  %2188 = vmatprep.mubr.f32.mxu1 %v2979_v9  ;;  %v1643_v16 = vld [vmem:[%s4598_s4 + $0x198] sm:$0xff]  ;;  %v714_v36 = vpop.permute.xlu1 %713  ;;  %v468_v42 = vmul.f32 %v404_v38, %v340_v37 }
  0xe3   : > { %1309 = vmatprep.mubr.f32.mxu0 %v2979_v9 }
  0xe5   : > { %2833 = vmatmul.mubr.msk.f32.gmra.mxu1 %vm950_vm0, %v1638_v44  ;;  %v341_v44 = vld [vmem:[%s4595_s1 + $0xf8] sm:$0xff] }
  0xe6   : > { %2740 = vmatmul.mubr.msk.f32.gmra.mxu0 %vm950_vm0, %v903_v21  ;;  %2194 = vmatprep.mubr.f32.mxu1 %v2979_v9  ;;  %v338_v21 = vld [vmem:[%s4595_s1 + $0xe0] sm:$0xff] }
  0xe7   : > { %1315 = vmatprep.mubr.f32.mxu0 %v2979_v9  ;;  %v466_v26 = vmul.f32 %v402_v22, %v338_v21 }
  0xe9   : > { %2834 = vmatmul.mubr.msk.f32.gmra.mxu1 %vm950_vm0, %v1639_v50  ;;  %v914_v34 = vmul.f32 %v709_v30, %v466_v26  ;;  %v916_v50 = vmul.f32 %v719_v46, %v468_v42  ;;  %v346_v30 = vld [vmem:[%s4595_s1 + $0x120] sm:$0xff] }
  0xea   : > { %2741 = vmatmul.mubr.msk.f32.gmra.mxu0 %vm950_vm0, %v904_v28  ;;  %2200 = vmatprep.mubr.f32.mxu1 %v2979_v9  ;;  %v339_v28 = vld [vmem:[%s4595_s1 + $0xe8] sm:$0xff] }
  0xeb   : > { %1321 = vmatprep.mubr.f32.mxu0 %v2979_v9 }
  0xed   : > { %v3736_v62 = vpop.f32.mrf.mxu1  ;;  %2835 = vmatmul.mubr.msk.f32.gmra.mxu1 %vm950_vm0, %v1640_v56  ;;  %v1648_v56 = vld [vmem:[%s4598_s4 + $0x1c0] sm:$0xff] }
  0xee   : > { %2742 = vmatmul.mubr.msk.f32.gmra.mxu0 %vm950_vm0, %v905_v33  ;;  %2206 = vmatprep.mubr.f32.mxu1 %v2979_v9  ;;  %v467_v33 = vmul.f32 %v403_v29, %v339_v28 }
  0xef   : > { %1327 = vmatprep.mubr.f32.mxu0 %v2979_v9  ;;  %v3745_v2 = vpop.f32.mrf.mxu1 }
  0xf0   : > { %v915_v41 = vmul.f32 %v714_v36, %v467_v33 }
  0xf1   : > { %2836 = vmatmul.mubr.msk.f32.gmra.mxu1 %vm950_vm0, %v1641_v63  ;;  %v3755_v6 = vpop.f32.mrf.mxu1  ;;  %v729_v63 = vpop.permute.xlu0 %728 }
  0xf2   : > { %2743 = vmatmul.mubr.msk.f32.gmra.mxu0 %vm950_vm0, %v906_v40  ;;  %2212 = vmatprep.mubr.f32.mxu1 %v2979_v9  ;;  %v1646_v40 = vld [vmem:[%s4598_s4 + $0x1b0] sm:$0xff]  ;;  %v918_v4 = vmul.f32 %v729_v63, %v470_v58  ;;  %v413_v63 = vld [vmem:[%s4596_s2 + $0x138] sm:$0xff] }
  0xf3   : > { %1333 = vmatprep.mubr.f32.mxu0 %v2979_v9  ;;  %v3762_v11 = vpop.f32.mrf.mxu1 }
  0xf5   : > { %2837 = vmatmul.mubr.msk.f32.gmra.mxu1 %vm950_vm0, %v1642_v7  ;;  %v3772_v15 = vpop.f32.mrf.mxu1  ;;  %v739_v21 = vpop.permute.xlu0 %738 }
  0xf6   : > { %2744 = vmatmul.mubr.msk.f32.gmra.mxu0 %vm950_vm0, %v907_v45  ;;  %2218 = vmatprep.mubr.f32.mxu1 %v2979_v9  ;;  %v405_v45 = vld [vmem:[%s4596_s2 + $0xf8] sm:$0xff] }
  0xf7   : > { %1339 = vmatprep.mubr.f32.mxu0 %v2979_v9  ;;  %v3779_v19 = vpop.f32.mrf.mxu1  ;;  %v469_v49 = vmul.f32 %v405_v45, %v341_v44  ;;  %v1653_v45 = vld [vmem:[%s4598_s4 + $0x1e8] sm:$0xff] }
  0xf9   : > { %2838 = vmatmul.mubr.msk.f32.gmra.mxu1 %vm950_vm0, %v1643_v16  ;;  %v3789_v23 = vpop.f32.mrf.mxu1  ;;  %v749_v42 = vpop.permute.xlu0 %748 }
  0xfa   : > { %2745 = vmatmul.mubr.msk.f32.gmra.mxu0 %vm950_vm0, %v908_v52  ;;  %2224 = vmatprep.mubr.f32.mxu1 %v2979_v9  ;;  %v724_v52 = vpop.permute.xlu1 %723 }
  0xfb   : > { %1345 = vmatprep.mubr.f32.mxu0 %v2979_v9  ;;  %v3796_v27 = vpop.f32.mrf.mxu1 }
  0xfd   : > { %2839 = vmatmul.mubr.msk.f32.gmra.mxu1 %vm950_vm0, %v1644_v24  ;;  %v3806_v31 = vpop.f32.mrf.mxu1  ;;  %v1651_v24 = vld [vmem:[%s4598_s4 + $0x1d8] sm:$0xff] }
  0xfe   : > { %2746 = vmatmul.mubr.msk.f32.gmra.mxu0 %vm950_vm0, %v909_v57  ;;  %2230 = vmatprep.mubr.f32.mxu1 %v2979_v9  ;;  %v917_v57 = vmul.f32 %v724_v52, %v469_v49  ;;  %v734_v7 = vpop.permute.xlu1 %733  ;;  %v348_v52 = vld [vmem:[%s4595_s1 + $0x130] sm:$0xff] }
  0xff   : > { %1351 = vmatprep.mubr.f32.mxu0 %v2979_v9  ;;  %v3813_v35 = vpop.f32.mrf.mxu1  ;;  %v919_v14 = vmul.f32 %v734_v7, %v471_v3  ;;  %v476_v58 = vmul.f32 %v412_v53, %v348_v52  ;;  %v477_v7 = vmul.f32 %v413_v63, %v349_v61  ;;  %v417_v52 = vld [vmem:[%s4596_s2 + $0x158] sm:$0xff] }
 0x101   : > { %2840 = vmatmul.mubr.msk.f32.gmra.mxu1 %vm950_vm0, %v1645_v32  ;;  %v3823_v39 = vpop.f32.mrf.mxu1  ;;  %v410_v32 = vld [vmem:[%s4596_s2 + $0x120] sm:$0xff] }
 0x102   : > { %2747 = vmatmul.mubr.msk.f32.gmra.mxu0 %vm950_vm0, %v910_v1  ;;  %2236 = vmatprep.mubr.f32.mxu1 %v2979_v9  ;;  %v1649_v1 = vld [vmem:[%s4598_s4 + $0x1c8] sm:$0xff]  ;;  %v744_v29 = vpop.permute.xlu1 %743  ;;  %v474_v37 = vmul.f32 %v410_v32, %v346_v30 }
 0x103   : > { %1357 = vmatprep.mubr.f32.mxu0 %v2979_v9  ;;  %v3830_v43 = vpop.f32.mrf.mxu1 }
 0x105   : > { %2841 = vmatmul.mubr.msk.f32.gmra.mxu1 %vm950_vm0, %v1646_v40  ;;  %v3840_v47 = vpop.f32.mrf.mxu1  ;;  %v347_v40 = vld [vmem:[%s4595_s1 + $0x128] sm:$0xff] }
 0x106   : > { %2748 = vmatmul.mubr.msk.f32.gmra.mxu0 %vm950_vm0, %v911_v8  ;;  %2242 = vmatprep.mubr.f32.mxu1 %v2979_v9  ;;  %v344_v8 = vld [vmem:[%s4595_s1 + $0x110] sm:$0xff] }
 0x107   : > { %1363 = vmatprep.mubr.f32.mxu0 %v2979_v9  ;;  %v3847_v51 = vpop.f32.mrf.mxu1  ;;  %v472_v16 = vmul.f32 %v408_v10, %v344_v8 }
 0x109   : > { %2842 = vmatmul.mubr.msk.f32.gmra.mxu1 %vm950_vm0, %v1647_v48  ;;  %v3857_v55 = vpop.f32.mrf.mxu1  ;;  %v920_v26 = vmul.f32 %v739_v21, %v472_v16  ;;  %v922_v48 = vmul.f32 %v749_v42, %v474_v37  ;;  %v414_v16 = vld [vmem:[%s4596_s2 + $0x140] sm:$0xff] }
 0x10a   : > { %2749 = vmatmul.mubr.msk.f32.gmra.mxu0 %vm950_vm0, %v912_v18  ;;  %2248 = vmatprep.mubr.f32.mxu1 %v2979_v9  ;;  %v345_v18 = vld [vmem:[%s4595_s1 + $0x118] sm:$0xff] }
 0x10b   : > { %1369 = vmatprep.mubr.f32.mxu0 %v2979_v9  ;;  %v3864_v59 = vpop.f32.mrf.mxu1 }
 0x10d   : > { %2843 = vmatmul.mubr.msk.f32.gmra.mxu1 %vm950_vm0, %v1648_v56  ;;  %v3874_v0 = vpop.f32.mrf.mxu1  ;;  %v1654_v56 = vld [vmem:[%s4598_s4 + $0x1f0] sm:$0xff] }
 0x10e   : > { %2750 = vmatmul.mubr.msk.f32.gmra.mxu0 %vm950_vm0, %v913_v25  ;;  %2254 = vmatprep.mubr.f32.mxu1 %v2979_v9  ;;  %v473_v25 = vmul.f32 %v409_v20, %v345_v18 }
 0x10f   : > { %1375 = vmatprep.mubr.f32.mxu0 %v2979_v9  ;;  %v3881_v5 = vpop.f32.mrf.mxu1 }
 0x110   : > { %v921_v36 = vmul.f32 %v744_v29, %v473_v25  ;;  %v351_v25 = vld [vmem:[%s4595_s1 + $0x148] sm:$0xff] }
 0x111   : > { %2844 = vmatmul.mubr.msk.f32.gmra.mxu1 %vm950_vm0, %v1649_v1  ;;  %v3891_v12 = vpop.f32.mrf.mxu1  ;;  %v759_v1 = vpop.permute.xlu0 %758 }
 0x112   : > { %2751 = vmatmul.mubr.msk.f32.gmra.mxu0 %vm950_vm0, %v914_v34  ;;  %2260 = vmatprep.mubr.f32.mxu1 %v2979_v9  ;;  %v1652_v34 = vld [vmem:[%s4598_s4 + $0x1e0] sm:$0xff]  ;;  %v924_v8 = vmul.f32 %v759_v1, %v476_v58 }
 0x113   : > { %1381 = vmatprep.mubr.f32.mxu0 %v2979_v9  ;;  %v3898_v17 = vpop.f32.mrf.mxu1  ;;  %v354_v1 = vld [vmem:[%s4595_s1 + $0x160] sm:$0xff] }
 0x115   : > { %2845 = vmatmul.mubr.msk.f32.gmra.mxu1 %vm950_vm0, %v1650_v13  ;;  %v3908_v22 = vpop.f32.mrf.mxu1  ;;  %v769_v29 = vpop.permute.xlu0 %768 }
 0x116   : > { %2752 = vmatmul.mubr.msk.f32.gmra.mxu0 %vm950_vm0, %v915_v41  ;;  %2266 = vmatprep.mubr.f32.mxu1 %v2979_v9  ;;  %v411_v41 = vld [vmem:[%s4596_s2 + $0x128] sm:$0xff] }
 0x117   : > { %1387 = vmatprep.mubr.f32.mxu0 %v2979_v9  ;;  %v3915_v28 = vpop.f32.mrf.mxu1  ;;  %v475_v46 = vmul.f32 %v411_v41, %v347_v40  ;;  %v352_v40 = vld [vmem:[%s4595_s1 + $0x150] sm:$0xff] }
 0x118   : > { %v416_v41 = vld [vmem:[%s4596_s2 + $0x150] sm:$0xff] }
 0x119   : > { %2846 = vmatmul.mubr.msk.f32.gmra.mxu1 %vm950_vm0, %v1651_v24  ;;  %v3925_v33 = vpop.f32.mrf.mxu1  ;;  %v779_v53 = vpop.permute.xlu0 %778 }
 0x11a   : > { %2753 = vmatmul.mubr.msk.f32.gmra.mxu0 %vm950_vm0, %v916_v50  ;;  %2272 = vmatprep.mubr.f32.mxu1 %v2979_v9  ;;  %v754_v50 = vpop.permute.xlu1 %753 }
 0x11b   : > { %1393 = vmatprep.mubr.f32.mxu0 %v2979_v9  ;;  %v3932_v38 = vpop.f32.mrf.mxu1 }
 0x11d   : > { %2847 = vmatmul.mubr.msk.f32.gmra.mxu1 %vm950_vm0, %v1652_v34  ;;  %v3942_v44 = vpop.f32.mrf.mxu1 }
 0x11e   : > { %2754 = vmatmul.mubr.msk.f32.gmra.mxu0 %vm950_vm0, %v917_v57  ;;  %2278 = vmatprep.mubr.f32.mxu1 %v2979_v9  ;;  %v923_v57 = vmul.f32 %v754_v50, %v475_v46  ;;  %v764_v13 = vpop.permute.xlu1 %763  ;;  %v480_v46 = vmul.f32 %v416_v41, %v352_v40  ;;  %v353_v50 = vld [vmem:[%s4595_s1 + $0x158] sm:$0xff]  ;;  %v420_v40 = vld [vmem:[%s4596_s2 + $0x170] sm:$0xff] }
 0x11f   : > { %1399 = vmatprep.mubr.f32.mxu0 %v2979_v9  ;;  %v3949_v49 = vpop.f32.mrf.mxu1  ;;  %v925_v20 = vmul.f32 %v764_v13, %v477_v7 }
 0x120   : > { %v928_v58 = vmul.f32 %v779_v53, %v480_v46  ;;  %v421_v53 = vld [vmem:[%s4596_s2 + $0x178] sm:$0xff] }
 0x121   : > { %2848 = vmatmul.mubr.msk.f32.gmra.mxu1 %vm950_vm0, %v1653_v45  ;;  %v3959_v54 = vpop.f32.mrf.mxu1 }
 0x122   : > { %2755 = vmatmul.mubr.msk.f32.gmra.mxu0 %vm950_vm0, %v918_v4  ;;  %2284 = vmatprep.mubr.f32.mxu1 %v2979_v9  ;;  %v1655_v4 = vld [vmem:[%s4598_s4 + $0x1f8] sm:$0xff]  ;;  %v774_v37 = vpop.permute.xlu1 %773 }
 0x123   : > { %1405 = vmatprep.mubr.f32.mxu0 %v2979_v9  ;;  %v3966_v60 = vpop.f32.mrf.mxu1 }
 0x125   : > { %2849 = vmatmul.mubr.msk.f32.gmra.mxu1 %vm950_vm0, %v1654_v56  ;;  %v3976_v3 = vpop.f32.mrf.mxu1 }
 0x126   : > { %2756 = vmatmul.mubr.msk.f32.gmra.mxu0 %vm950_vm0, %v919_v14  ;;  %2290 = vmatprep.mubr.f32.mxu1 %v2979_v9  ;;  %v350_v14 = vld [vmem:[%s4595_s1 + $0x140] sm:$0xff]  ;;  %v784_v63 = vpop.permute.xlu1 %783 }
 0x127   : > { %1411 = vmatprep.mubr.f32.mxu0 %v2979_v9  ;;  %v3983_v10 = vpop.f32.mrf.mxu1  ;;  %v478_v21 = vmul.f32 %v414_v16, %v350_v14  ;;  %v355_v16 = vld [vmem:[%s4595_s1 + $0x168] sm:$0xff] }
 0x129   : > { %2850 = vmatmul.mubr.msk.f32.gmra.mxu1 %vm950_vm0, %v1655_v4  ;;  %v3993_v18 = vpop.f32.mrf.mxu1  ;;  %v926_v34 = vmul.f32 %v769_v29, %v478_v21  ;;  %v418_v4 = vld [vmem:[%s4596_s2 + $0x160] sm:$0xff]  ;;  %v789_v21 = vpop.permute.xlu0 %788 }
 0x12a   : > { %2757 = vmatmul.mubr.msk.f32.gmra.mxu0 %vm950_vm0, %v920_v26  ;;  %v415_v26 = vld [vmem:[%s4596_s2 + $0x148] sm:$0xff]  ;;  %v482_v13 = vmul.f32 %v418_v4, %v354_v1 }
 0x12b   : > { %1417 = vmatprep.mubr.f32.mxu0 %v2979_v9  ;;  %v3996_v24 = vpop.f32.mrf.mxu1  ;;  %v479_v32 = vmul.f32 %v415_v26, %v351_v25 }
 0x12c   : > { %v930_v29 = vmul.f32 %v789_v21, %v482_v13  ;;  %v358_v13 = vld [vmem:[%s4595_s1 + $0x180] sm:$0xff] }
 0x12d   : > { %v4005_v30 = vpop.f32.mrf.mxu1  ;;  %v927_v45 = vmul.f32 %v774_v37, %v479_v32  ;;  %v356_v37 = vld [vmem:[%s4595_s1 + $0x170] sm:$0xff] }
 0x12e   : > { %2758 = vmatmul.mubr.msk.f32.gmra.mxu0 %vm950_vm0, %v921_v36  ;;  %v484_v46 = vmul.f32 %v420_v40, %v356_v37  ;;  %v423_v37 = vld [vmem:[%s4596_s2 + $0x188] sm:$0xff] }
 0x12f   : > { %1423 = vmatprep.mubr.f32.mxu0 %v2979_v9  ;;  %v4008_v36 = vpop.f32.mrf.mxu1 }
 0x131   : > { %v4017_v42 = vpop.f32.mrf.mxu1 }
 0x132   : > { %2759 = vmatmul.mubr.msk.f32.gmra.mxu0 %vm950_vm0, %v922_v48 }
 0x133   : > { %1429 = vmatprep.mubr.f32.mxu0 %v2979_v9  ;;  %v4020_v48 = vpop.f32.mrf.mxu1 }
 0x135   : > { %v4029_v56 = vpop.f32.mrf.mxu1 }
 0x136   : > { %2760 = vmatmul.mubr.msk.f32.gmra.mxu0 %vm950_vm0, %v923_v57  ;;  %v481_v57 = vmul.f32 %v417_v52, %v353_v50  ;;  %v357_v52 = vld [vmem:[%s4595_s1 + $0x178] sm:$0xff] }
 0x137   : > { %1435 = vmatprep.mubr.f32.mxu0 %v2979_v9  ;;  %v4032_v61 = vpop.f32.mrf.mxu1 }
 0x139   : > { %v4041_v7 = vpop.f32.mrf.mxu1 }
 0x13a   : > { %2761 = vmatmul.mubr.msk.f32.gmra.mxu0 %vm950_vm0, %v924_v8  ;;  %v929_v8 = vmul.f32 %v784_v63, %v481_v57  ;;  %v799_v57 = vpop.permute.xlu0 %798  ;;  %v485_v63 = vmul.f32 %v421_v53, %v357_v52 }
 0x13b   : > { %1441 = vmatprep.mubr.f32.mxu0 %v2979_v9  ;;  %v4044_v14 = vpop.f32.mrf.mxu1  ;;  %v932_v1 = vmul.f32 %v799_v57, %v484_v46 }
 0x13d   : > { %v4053_v25 = vpop.f32.mrf.mxu1 }
 0x13e   : > { %2762 = vmatmul.mubr.msk.f32.gmra.mxu0 %vm950_vm0, %v925_v20  ;;  %v419_v20 = vld [vmem:[%s4596_s2 + $0x168] sm:$0xff]  ;;  %v809_v40 = vpop.permute.xlu0 %808 }
 0x13f   : > { %1447 = vmatprep.mubr.f32.mxu0 %v2979_v9  ;;  %v483_v26 = vmul.f32 %v419_v20, %v355_v16  ;;  %v4056_v32 = vpop.f32.mrf.mxu1  ;;  %v422_v16 = vld [vmem:[%s4596_s2 + $0x180] sm:$0xff] }
 0x141   : > { %v4065_v41 = vpop.f32.mrf.mxu1 }
 0x142   : > { %2763 = vmatmul.mubr.msk.f32.gmra.mxu0 %vm950_vm0, %v926_v34  ;;  %v794_v34 = vpop.permute.xlu1 %793 }
 0x143   : > { %1453 = vmatprep.mubr.f32.mxu0 %v2979_v9  ;;  %v4068_v50 = vpop.f32.mrf.mxu1 }
 0x146   : > { %2764 = vmatmul.mubr.msk.f32.gmra.mxu0 %vm950_vm0, %v927_v45  ;;  %v931_v45 = vmul.f32 %v794_v34, %v483_v26  ;;  %v486_v26 = vmul.f32 %v422_v16, %v358_v13  ;;  %v359_v34 = vld [vmem:[%s4595_s1 + $0x188] sm:$0xff] }
 0x147   : > { %1459 = vmatprep.mubr.f32.mxu0 %v2979_v9  ;;  %v487_v46 = vmul.f32 %v423_v37, %v359_v34  ;;  %v361_v37 = vld [vmem:[%s4595_s1 + $0x198] sm:$0xff] }
 0x148   : > { %v934_v52 = vmul.f32 %v809_v40, %v486_v26  ;;  %v425_v40 = vld [vmem:[%s4596_s2 + $0x198] sm:$0xff] }
 0x14a   : > { %2765 = vmatmul.mubr.msk.f32.gmra.mxu0 %vm950_vm0, %v928_v58  ;;  %v4077_v58 = vpop.f32.mrf.mxu1 }
 0x14b   : > { %1465 = vmatprep.mubr.f32.mxu0 %v2979_v9 }
 0x14c   : > { %v4080_v4 = vpop.f32.mrf.mxu1 }
 0x14d   : > { %4605 = vst [vmem:[#allocation7_spill] sm:$0xff] %v4080_v4 }
 0x14e   : > { %2766 = vmatmul.mubr.msk.f32.gmra.mxu0 %vm950_vm0, %v929_v8  ;;  %v804_v8 = vpop.permute.xlu1 %803  ;;  %v4089_v20 = vpop.f32.mrf.mxu1 }
 0x14f   : > { %1471 = vmatprep.mubr.f32.mxu0 %v2979_v9  ;;  %4606 = vst [vmem:[#allocation8_spill] sm:$0xff] %v4089_v20  ;;  %v933_v21 = vmul.f32 %v804_v8, %v485_v63  ;;  %v360_v63 = vld [vmem:[%s4595_s1 + $0x190] sm:$0xff]  ;;  %v362_v20 = vld [vmem:[%s4595_s1 + $0x1a0] sm:$0xff] }
 0x152   : > { %2767 = vmatmul.mubr.msk.f32.gmra.mxu0 %vm950_vm0, %v930_v29  ;;  %v4092_v29 = vpop.f32.mrf.mxu1  ;;  %v814_v57 = vpop.permute.xlu1 %813 }
 0x153   : > { %1477 = vmatprep.mubr.f32.mxu0 %v2979_v9  ;;  %4607 = vst [vmem:[#allocation9_spill] sm:$0xff] %v4092_v29  ;;  %v935_v16 = vmul.f32 %v814_v57, %v487_v46 }
 0x156   : > { %2768 = vmatmul.mubr.msk.f32.gmra.mxu0 %vm950_vm0, %v931_v45  ;;  %v4101_v45 = vpop.f32.mrf.mxu1  ;;  %v824_v29 = vpop.permute.xlu1 %823 }
 0x157   : > { %1483 = vmatprep.mubr.f32.mxu0 %v2979_v9  ;;  %4608 = vst [vmem:[#allocation10_spill] sm:$0xff] %v4101_v45 }
 0x158   : > { %v4104_v53 = vpop.f32.mrf.mxu1 }
 0x159   : > { %4609 = vst [vmem:[#allocation11_spill] sm:$0xff] %v4104_v53  ;;  %v819_v53 = vpop.permute.xlu0 %818 }
 0x15a   : > { %2769 = vmatmul.mubr.msk.f32.gmra.mxu0 %vm950_vm0, %v932_v1  ;;  %v424_v1 = vld [vmem:[%s4596_s2 + $0x190] sm:$0xff]  ;;  %v4113_v13 = vpop.f32.mrf.mxu1 }
 0x15b   : > { %1489 = vmatprep.mubr.f32.mxu0 %v2979_v9  ;;  %4610 = vst [vmem:[#allocation12_spill] sm:$0xff] %v4113_v13 }
 0x15c   : > { %v4116_v34 = vpop.f32.mrf.mxu1 }
 0x15d   : > { %4611 = vst [vmem:[#allocation13_spill] sm:$0xff] %v4116_v34 }
 0x15e   : > { %2770 = vmatmul.mubr.msk.f32.gmra.mxu0 %vm950_vm0, %v933_v21  ;;  %v488_v21 = vmul.f32 %v424_v1, %v360_v63  ;;  %v489_v63 = vmul.f32 %v425_v40, %v361_v37 }
 0x15f   : > { %1495 = vmatprep.mubr.f32.mxu0 %v2979_v9 }
 0x160   : > { %v936_v1 = vmul.f32 %v819_v53, %v488_v21  ;;  %v937_v40 = vmul.f32 %v824_v29, %v489_v63 }
 0x162   : > { %v1209_v8 = vpop.f32.mrf.mxu0  ;;  %2771 = vmatmul.mubr.msk.f32.gmra.mxu0 %vm950_vm0, %v934_v52  ;;  %v4125_v52 = vpop.f32.mrf.mxu1 }
 0x163   : > { %1501 = vmatprep.mubr.f32.mxu0 %v2979_v9  ;;  %4612 = vst [vmem:[#allocation14_spill] sm:$0xff] %v4125_v52  ;;  %v2297_v46 = vmul.f32 %v3736_v62, %v1209_v8 }
 0x164   : > { %v1211_v26 = vpop.f32.mrf.mxu0  ;;  %v4130_v13 = vpop.f32.mrf.mxu1 }
 0x165   : > { %4613 = vst [vmem:[#allocation15_spill] sm:$0xff] %v4130_v13  ;;  %v2298_v62 = vmul.f32 %v3745_v2, %v1211_v26  ;;  %v363_v2 = vld [vmem:[%s4595_s1 + $0x1a8] sm:$0xff]  ;;  %v829_v26 = vpop.permute.xlu0 %828 }
 0x166   : > { %v1215_v45 = vpop.f32.mrf.mxu0  ;;  %2772 = vmatmul.mubr.msk.f32.gmra.mxu0 %vm950_vm0, %v935_v16  ;;  %v426_v16 = vld [vmem:[%s4596_s2 + $0x1a0] sm:$0xff]  ;;  %v4141_v53 = vpop.f32.mrf.mxu1 }
 0x167   : > { %v2299_v57 = vmul.f32 %v3755_v6, %v1215_v45  ;;  %1507 = vmatprep.mubr.f32.mxu0 %v2979_v9  ;;  %v490_v13 = vmul.f32 %v426_v16, %v362_v20 }
 0x168   : > { %v1217_v34 = vpop.f32.mrf.mxu0  ;;  %v4145_v4 = vpop.f32.mrf.mxu1 }
 0x169   : > { %v2425_v8 = vadd.f32 %v2299_v57, %v2297_v46  ;;  %v2300_v6 = vmul.f32 %v3762_v11, %v1217_v34  ;;  %v427_v11 = vld [vmem:[%s4596_s2 + $0x1a8] sm:$0xff] }
 0x16a   : > { %v1221_v45 = vpop.f32.mrf.mxu0  ;;  %2773 = vmatmul.mubr.msk.f32.gmra.mxu0 %vm950_vm0, %v936_v1  ;;  %v4155_v29 = vpop.f32.mrf.mxu1  ;;  %v491_v63 = vmul.f32 %v427_v11, %v363_v2  ;;  %v938_v1 = vmul.f32 %v829_v26, %v490_v13 }
 0x16b   : > { %v2494_v21 = vadd.f32 %v2300_v6, %v2298_v62  ;;  %v2301_v37 = vmul.f32 %v3772_v15, %v1221_v45  ;;  %1513 = vmatprep.mubr.f32.mxu0 %v2979_v9  ;;  %v834_v6 = vpop.permute.xlu1 %833 }
 0x16c   : > { %v1223_v52 = vpop.f32.mrf.mxu0  ;;  %v4159_v62 = vpop.f32.mrf.mxu1 }
 0x16d   : > { %v2426_v34 = vadd.f32 %v2425_v8, %v2301_v37  ;;  %v2302_v46 = vmul.f32 %v3779_v19, %v1223_v52  ;;  %v364_v19 = vld [vmem:[%s4595_s1 + $0x1b0] sm:$0xff] }
 0x16e   : > { %v1227_v15 = vpop.f32.mrf.mxu0  ;;  %2774 = vmatmul.mubr.msk.f32.gmra.mxu0 %vm950_vm0, %v937_v40  ;;  %v428_v52 = vld [vmem:[%s4596_s2 + $0x1b0] sm:$0xff]  ;;  %v939_v40 = vmul.f32 %v834_v6, %v491_v63 }
 0x16f   : > { %v2495_v20 = vadd.f32 %v2494_v21, %v2302_v46  ;;  %v2303_v57 = vmul.f32 %v3789_v23, %v1227_v15  ;;  %1519 = vmatprep.mubr.f32.mxu0 %v2979_v9  ;;  %v4169_v21 = vpop.f32.mrf.mxu1  ;;  %v492_v2 = vmul.f32 %v428_v52, %v364_v19  ;;  %v839_v46 = vpop.permute.xlu0 %838 }
 0x170   : > { %v1229_v16 = vpop.f32.mrf.mxu0 }
 0x171   : > { %v2427_v8 = vadd.f32 %v2426_v34, %v2303_v57  ;;  %v2304_v45 = vmul.f32 %v3796_v27, %v1229_v16  ;;  %v4173_v26 = vpop.f32.mrf.mxu1  ;;  %v365_v34 = vld [vmem:[%s4595_s1 + $0x1b8] sm:$0xff]  ;;  %v940_v6 = vmul.f32 %v839_v46, %v492_v2 }
 0x172   : > { %v1233_v23 = vpop.f32.mrf.mxu0  ;;  %2775 = vmatmul.mubr.msk.f32.gmra.mxu0 %vm950_vm0, %v938_v1  ;;  %v429_v27 = vld [vmem:[%s4596_s2 + $0x1b8] sm:$0xff] }
 0x173   : > { %v2496_v13 = vadd.f32 %v2495_v20, %v2304_v45  ;;  %v2305_v37 = vmul.f32 %v3806_v31, %v1233_v23  ;;  %1525 = vmatprep.mubr.f32.mxu0 %v2979_v9  ;;  %v4183_v57 = vpop.f32.mrf.mxu1  ;;  %v493_v16 = vmul.f32 %v429_v27, %v365_v34  ;;  %v844_v45 = vpop.permute.xlu1 %843 }
 0x174   : > { %v1235_v11 = vpop.f32.mrf.mxu0 }
 0x175   : > { %v2428_v15 = vadd.f32 %v2427_v8, %v2305_v37  ;;  %v2306_v20 = vmul.f32 %v3813_v35, %v1235_v11  ;;  %v4187_v52 = vpop.f32.mrf.mxu1  ;;  %v366_v35 = vld [vmem:[%s4595_s1 + $0x1c0] sm:$0xff]  ;;  %v941_v11 = vmul.f32 %v844_v45, %v493_v16 }
 0x176   : > { %v1239_v31 = vpop.f32.mrf.mxu0  ;;  %2776 = vmatmul.mubr.msk.f32.gmra.mxu0 %vm950_vm0, %v939_v40  ;;  %v430_v8 = vld [vmem:[%s4596_s2 + $0x1c0] sm:$0xff] }
 0x177   : > { %v2497_v63 = vadd.f32 %v2496_v13, %v2306_v20  ;;  %v2307_v1 = vmul.f32 %v3823_v39, %v1239_v31  ;;  %1531 = vmatprep.mubr.f32.mxu0 %v2979_v9  ;;  %v4197_v37 = vpop.f32.mrf.mxu1  ;;  %v494_v34 = vmul.f32 %v430_v8, %v366_v35  ;;  %v849_v20 = vpop.permute.xlu0 %848 }
 0x178   : > { %v1241_v19 = vpop.f32.mrf.mxu0 }
 0x179   : > { %v2429_v23 = vadd.f32 %v2428_v15, %v2307_v1  ;;  %v2308_v13 = vmul.f32 %v3830_v43, %v1241_v19  ;;  %v4201_v46 = vpop.f32.mrf.mxu1  ;;  %v367_v15 = vld [vmem:[%s4595_s1 + $0x1c8] sm:$0xff]  ;;  %v942_v45 = vmul.f32 %v849_v20, %v494_v34 }
 0x17a   : > { %v1245_v39 = vpop.f32.mrf.mxu0  ;;  %2777 = vmatmul.mubr.msk.f32.gmra.mxu0 %vm950_vm0, %v940_v6  ;;  %v431_v43 = vld [vmem:[%s4596_s2 + $0x1c8] sm:$0xff] }
 0x17b   : > { %v2498_v40 = vadd.f32 %v2497_v63, %v2308_v13  ;;  %v2309_v2 = vmul.f32 %v3840_v47, %v1245_v39  ;;  %1537 = vmatprep.mubr.f32.mxu0 %v2979_v9  ;;  %v4211_v1 = vpop.f32.mrf.mxu1  ;;  %v495_v19 = vmul.f32 %v431_v43, %v367_v15  ;;  %v854_v13 = vpop.permute.xlu1 %853 }
 0x17c   : > { %v1247_v27 = vpop.f32.mrf.mxu0 }
 0x17d   : > { %v2430_v31 = vadd.f32 %v2429_v23, %v2309_v2  ;;  %v2310_v63 = vmul.f32 %v3847_v51, %v1247_v27  ;;  %v4215_v8 = vpop.f32.mrf.mxu1  ;;  %v368_v51 = vld [vmem:[%s4595_s1 + $0x1d0] sm:$0xff]  ;;  %v943_v27 = vmul.f32 %v854_v13, %v495_v19 }
 0x17e   : > { %v1251_v47 = vpop.f32.mrf.mxu0  ;;  %2778 = vmatmul.mubr.msk.f32.gmra.mxu0 %vm950_vm0, %v941_v11  ;;  %v432_v23 = vld [vmem:[%s4596_s2 + $0x1d0] sm:$0xff] }
 0x17f   : > { %v2499_v16 = vadd.f32 %v2498_v40, %v2310_v63  ;;  %v2311_v6 = vmul.f32 %v3857_v55, %v1251_v47  ;;  %1543 = vmatprep.mubr.f32.mxu0 %v2979_v9  ;;  %v4225_v2 = vpop.f32.mrf.mxu1  ;;  %v496_v15 = vmul.f32 %v432_v23, %v368_v51  ;;  %v859_v63 = vpop.permute.xlu0 %858 }
 0x180   : > { %v1253_v35 = vpop.f32.mrf.mxu0 }
 0x181   : > { %v2431_v39 = vadd.f32 %v2430_v31, %v2311_v6  ;;  %v2312_v40 = vmul.f32 %v3864_v59, %v1253_v35  ;;  %v4229_v20 = vpop.f32.mrf.mxu1  ;;  %v369_v31 = vld [vmem:[%s4595_s1 + $0x1d8] sm:$0xff]  ;;  %v944_v13 = vmul.f32 %v859_v63, %v496_v15 }
 0x182   : > { %v1257_v55 = vpop.f32.mrf.mxu0  ;;  %2779 = vmatmul.mubr.msk.f32.gmra.mxu0 %vm950_vm0, %v942_v45  ;;  %v433_v59 = vld [vmem:[%s4596_s2 + $0x1d8] sm:$0xff] }
 0x183   : > { %v2500_v11 = vadd.f32 %v2499_v16, %v2312_v40  ;;  %v2313_v34 = vmul.f32 %v3874_v0, %v1257_v55  ;;  %1549 = vmatprep.mubr.f32.mxu0 %v2979_v9  ;;  %v4239_v6 = vpop.f32.mrf.mxu1  ;;  %v497_v35 = vmul.f32 %v433_v59, %v369_v31  ;;  %v864_v40 = vpop.permute.xlu1 %863 }
 0x184   : > { %v1259_v43 = vpop.f32.mrf.mxu0 }
 0x185   : > { %v2432_v47 = vadd.f32 %v2431_v39, %v2313_v34  ;;  %v2314_v16 = vmul.f32 %v3881_v5, %v1259_v43  ;;  %v4243_v23 = vpop.f32.mrf.mxu1  ;;  %v370_v5 = vld [vmem:[%s4595_s1 + $0x1e0] sm:$0xff]  ;;  %v945_v43 = vmul.f32 %v864_v40, %v497_v35 }
 0x186   : > { %v1263_v0 = vpop.f32.mrf.mxu0  ;;  %2780 = vmatmul.mubr.msk.f32.gmra.mxu0 %vm950_vm0, %v943_v27  ;;  %v434_v39 = vld [vmem:[%s4596_s2 + $0x1e0] sm:$0xff] }
 0x187   : > { %v2501_v19 = vadd.f32 %v2500_v11, %v2314_v16  ;;  %v2315_v45 = vmul.f32 %v3891_v12, %v1263_v0  ;;  %1555 = vmatprep.mubr.f32.mxu0 %v2979_v9  ;;  %v4253_v34 = vpop.f32.mrf.mxu1  ;;  %v498_v31 = vmul.f32 %v434_v39, %v370_v5  ;;  %v869_v16 = vpop.permute.xlu0 %868 }
 0x188   : > { %v1265_v51 = vpop.f32.mrf.mxu0 }
 0x189   : > { %v2433_v55 = vadd.f32 %v2432_v47, %v2315_v45  ;;  %v2316_v11 = vmul.f32 %v3898_v17, %v1265_v51  ;;  %v4257_v63 = vpop.f32.mrf.mxu1  ;;  %v371_v47 = vld [vmem:[%s4595_s1 + $0x1e8] sm:$0xff]  ;;  %v946_v40 = vmul.f32 %v869_v16, %v498_v31 }
 0x18a   : > { %v1269_v12 = vpop.f32.mrf.mxu0  ;;  %2781 = vmatmul.mubr.msk.f32.gmra.mxu0 %vm950_vm0, %v944_v13  ;;  %v435_v17 = vld [vmem:[%s4596_s2 + $0x1e8] sm:$0xff] }
 0x18b   : > { %v2502_v27 = vadd.f32 %v2501_v19, %v2316_v11  ;;  %v2317_v15 = vmul.f32 %v3908_v22, %v1269_v12  ;;  %1561 = vmatprep.mubr.f32.mxu0 %v2979_v9  ;;  %v4267_v45 = vpop.f32.mrf.mxu1  ;;  %v499_v51 = vmul.f32 %v435_v17, %v371_v47  ;;  %v874_v11 = vpop.permute.xlu1 %873 }
 0x18c   : > { %v1271_v59 = vpop.f32.mrf.mxu0 }
 0x18d   : > { %v2434_v0 = vadd.f32 %v2433_v55, %v2317_v15  ;;  %v2318_v19 = vmul.f32 %v3915_v28, %v1271_v59  ;;  %v4271_v39 = vpop.f32.mrf.mxu1  ;;  %v372_v28 = vld [vmem:[%s4595_s1 + $0x1f0] sm:$0xff]  ;;  %v947_v59 = vmul.f32 %v874_v11, %v499_v51 }
 0x18e   : > { %v1275_v22 = vpop.f32.mrf.mxu0  ;;  %2782 = vmatmul.mubr.msk.f32.gmra.mxu0 %vm950_vm0, %v945_v43  ;;  %v436_v55 = vld [vmem:[%s4596_s2 + $0x1f0] sm:$0xff] }
 0x18f   : > { %v2503_v35 = vadd.f32 %v2502_v27, %v2318_v19  ;;  %v2319_v13 = vmul.f32 %v3925_v33, %v1275_v22  ;;  %1567 = vmatprep.mubr.f32.mxu0 %v2979_v9  ;;  %v4281_v15 = vpop.f32.mrf.mxu1  ;;  %v500_v47 = vmul.f32 %v436_v55, %v372_v28  ;;  %v879_v19 = vpop.permute.xlu0 %878 }
 0x190   : > { %v1277_v5 = vpop.f32.mrf.mxu0 }
 0x191   : > { %v2435_v12 = vadd.f32 %v2434_v0, %v2319_v13  ;;  %v2320_v27 = vmul.f32 %v3932_v38, %v1277_v5  ;;  %v4285_v16 = vpop.f32.mrf.mxu1  ;;  %v373_v0 = vld [vmem:[%s4595_s1 + $0x1f8] sm:$0xff]  ;;  %v948_v11 = vmul.f32 %v879_v19, %v500_v47 }
 0x192   : > { %v1281_v33 = vpop.f32.mrf.mxu0  ;;  %2783 = vmatmul.mubr.msk.f32.gmra.mxu0 %vm950_vm0, %v946_v40  ;;  %v437_v38 = vld [vmem:[%s4596_s2 + $0x1f8] sm:$0xff] }
 0x193   : > { %v2504_v43 = vadd.f32 %v2503_v35, %v2320_v27  ;;  %v2321_v31 = vmul.f32 %v3942_v44, %v1281_v33  ;;  %1573 = vmatprep.mubr.f32.mxu0 %v2979_v9  ;;  %v4295_v13 = vpop.f32.mrf.mxu1  ;;  %v501_v5 = vmul.f32 %v437_v38, %v373_v0  ;;  %v884_v27 = vpop.permute.xlu1 %883 }
 0x194   : > { %v1283_v17 = vpop.f32.mrf.mxu0 }
 0x195   : > { %v2436_v22 = vadd.f32 %v2435_v12, %v2321_v31  ;;  %v2322_v35 = vmul.f32 %v3949_v49, %v1283_v17  ;;  %v4299_v55 = vpop.f32.mrf.mxu1 }
 0x196   : > { %v1287_v44 = vpop.f32.mrf.mxu0  ;;  %2784 = vmatmul.mubr.msk.f32.gmra.mxu0 %vm950_vm0, %v947_v59 }
 0x197   : > { %v2505_v51 = vadd.f32 %v2504_v43, %v2322_v35  ;;  %v2323_v40 = vmul.f32 %v3959_v54, %v1287_v44  ;;  %1579 = vmatprep.mubr.f32.mxu0 %v2979_v9  ;;  %v949_v54 = vmul.f32 %v884_v27, %v501_v5  ;;  %v4305_v17 = vpop.f32.mrf.mxu1 }
 0x198   : > { %v1289_v28 = vpop.f32.mrf.mxu0 }
 0x199   : > { %v2437_v33 = vadd.f32 %v2436_v22, %v2323_v40  ;;  %v2324_v12 = vmul.f32 %v3966_v60, %v1289_v28  ;;  %v4310_v35 = vpop.f32.mrf.mxu1 }
 0x19a   : > { %v1293_v49 = vpop.f32.mrf.mxu0  ;;  %2785 = vmatmul.mubr.msk.f32.gmra.mxu0 %vm950_vm0, %v948_v11 }
 0x19b   : > { %v2506_v31 = vadd.f32 %v2505_v51, %v2324_v12  ;;  %v2325_v59 = vmul.f32 %v3976_v3, %v1293_v49  ;;  %1585 = vmatprep.mubr.f32.mxu0 %v2979_v9  ;;  %v4314_v11 = vpop.f32.mrf.mxu1 }
 0x19c   : > { %v1295_v43 = vpop.f32.mrf.mxu0 }
 0x19d   : > { %v2438_v47 = vadd.f32 %v2437_v33, %v2325_v59  ;;  %v2326_v0 = vmul.f32 %v3983_v10, %v1295_v43  ;;  %v4318_v49 = vpop.f32.mrf.mxu1 }
 0x19e   : > { %v1299_v38 = vpop.f32.mrf.mxu0  ;;  %2786 = vmatmul.mubr.msk.f32.gmra.mxu0 %vm950_vm0, %v949_v54 }
 0x19f   : > { %v2507_v19 = vadd.f32 %v2506_v31, %v2326_v0  ;;  %v2327_v60 = vmul.f32 %v3993_v18, %v1299_v38 }
 0x1a0   : > { %v1301_v22 = vpop.f32.mrf.mxu0 }
 0x1a1   : > { %v2439_v44 = vadd.f32 %v2438_v47, %v2327_v60  ;;  %v2328_v3 = vmul.f32 %v3996_v24, %v1301_v22  ;;  %v4322_v47 = vpop.f32.mrf.mxu1 }
 0x1a2   : > { %v1305_v9 = vpop.f32.mrf.mxu0 }
 0x1a3   : > { %v2508_v51 = vadd.f32 %v2507_v19, %v2328_v3  ;;  %v2329_v40 = vmul.f32 %v4005_v30, %v1305_v9  ;;  %v4326_v22 = vpop.f32.mrf.mxu1 }
 0x1a4   : > { %v1307_v5 = vpop.f32.mrf.mxu0 }
 0x1a5   : > { %v2440_v10 = vadd.f32 %v2439_v44, %v2329_v40  ;;  %v2330_v28 = vmul.f32 %v4008_v36, %v1307_v5  ;;  %v4330_v40 = vpop.f32.mrf.mxu1 }
 0x1a6   : > { %v1311_v27 = vpop.f32.mrf.mxu0 }
 0x1a7   : > { %v2509_v33 = vadd.f32 %v2508_v51, %v2330_v28  ;;  %v2331_v18 = vmul.f32 %v4017_v42, %v1311_v27 }
 0x1a8   : > { %v1313_v12 = vpop.f32.mrf.mxu0 }
 0x1a9   : > { %v2441_v31 = vadd.f32 %v2440_v10, %v2331_v18  ;;  %v2332_v24 = vmul.f32 %v4020_v48, %v1313_v12 }
 0x1aa   : > { %v1317_v59 = vpop.f32.mrf.mxu0 }
 0x1ab   : > { %v2510_v54 = vadd.f32 %v2509_v33, %v2332_v24  ;;  %v2333_v30 = vmul.f32 %v4029_v56, %v1317_v59  ;;  %v4334_v33 = vpop.f32.mrf.mxu1 }
 0x1ac   : > { %v1319_v43 = vpop.f32.mrf.mxu0 }
 0x1ad   : > { %v2442_v0 = vadd.f32 %v2441_v31, %v2333_v30  ;;  %v2334_v36 = vmul.f32 %v4032_v61, %v1319_v43  ;;  %v4338_v59 = vpop.f32.mrf.mxu1  ;;  %v4614_v30 = vld [vmem:[#allocation7_spill] sm:$0xff] }
 0x1ae   : > { %v1323_v38 = vpop.f32.mrf.mxu0 }
 0x1af   : > { %v2511_v19 = vadd.f32 %v2510_v54, %v2334_v36  ;;  %v2335_v42 = vmul.f32 %v4041_v7, %v1323_v38  ;;  %v4615_v36 = vld [vmem:[#allocation8_spill] sm:$0xff] }
 0x1b0   : > { %v1325_v60 = vpop.f32.mrf.mxu0 }
 0x1b1   : > { %v2443_v44 = vadd.f32 %v2442_v0, %v2335_v42  ;;  %v2336_v48 = vmul.f32 %v4044_v14, %v1325_v60  ;;  %v4616_v60 = vld [vmem:[#allocation9_spill] sm:$0xff] }
 0x1b2   : > { %v1329_v3 = vpop.f32.mrf.mxu0 }
 0x1b3   : > { %v2512_v9 = vadd.f32 %v2511_v19, %v2336_v48  ;;  %v2337_v56 = vmul.f32 %v4053_v25, %v1329_v3  ;;  %v4342_v19 = vpop.f32.mrf.mxu1  ;;  %v4617_v3 = vld [vmem:[#allocation10_spill] sm:$0xff] }
 0x1b4   : > { %v1331_v51 = vpop.f32.mrf.mxu0 }
 0x1b5   : > { %v2444_v5 = vadd.f32 %v2443_v44, %v2337_v56  ;;  %v2338_v61 = vmul.f32 %v4056_v32, %v1331_v51  ;;  %v4346_v56 = vpop.f32.mrf.mxu1 }
 0x1b6   : > { %v1335_v10 = vpop.f32.mrf.mxu0 }
 0x1b7   : > { %v2513_v28 = vadd.f32 %v2512_v9, %v2338_v61  ;;  %v2339_v7 = vmul.f32 %v4065_v41, %v1335_v10 }
 0x1b8   : > { %v1337_v27 = vpop.f32.mrf.mxu0 }
 0x1b9   : > { %v2445_v18 = vadd.f32 %v2444_v5, %v2339_v7  ;;  %v2340_v14 = vmul.f32 %v4068_v50, %v1337_v27  ;;  %v4618_v5 = vld [vmem:[#allocation11_spill] sm:$0xff]  ;;  %v4619_v7 = vld [vmem:[#allocation12_spill] sm:$0xff] }
 0x1ba   : > { %v1341_v12 = vpop.f32.mrf.mxu0 }
 0x1bb   : > { %v2514_v31 = vadd.f32 %v2513_v28, %v2340_v14  ;;  %v2341_v25 = vmul.f32 %v4077_v58, %v1341_v12  ;;  %v4350_v14 = vpop.f32.mrf.mxu1 }
 0x1bc   : > { %v1343_v24 = vpop.f32.mrf.mxu0 }
 0x1bd   : > { %v2446_v54 = vadd.f32 %v2445_v18, %v2341_v25  ;;  %v2342_v32 = vmul.f32 %v4614_v30, %v1343_v24  ;;  %v4621_v30 = vld [vmem:[#allocation14_spill] sm:$0xff] }
 0x1be   : > { %v1347_v43 = vpop.f32.mrf.mxu0 }
 0x1bf   : > { %v2515_v0 = vadd.f32 %v2514_v31, %v2342_v32  ;;  %v2343_v41 = vmul.f32 %v4615_v36, %v1347_v43  ;;  %v4620_v31 = vld [vmem:[#allocation13_spill] sm:$0xff] }
 0x1c0   : > { %v1349_v38 = vpop.f32.mrf.mxu0 }
 0x1c1   : > { %v2447_v42 = vadd.f32 %v2446_v54, %v2343_v41  ;;  %v2344_v50 = vmul.f32 %v4616_v60, %v1349_v38  ;;  %v4623_v41 = vld [vmem:[#allocation15_spill] sm:$0xff] }
 0x1c2   : > { %v1353_v44 = vpop.f32.mrf.mxu0 }
 0x1c3   : > { %v2516_v48 = vadd.f32 %v2515_v0, %v2344_v50  ;;  %v2345_v58 = vmul.f32 %v4617_v3, %v1353_v44  ;;  %v4354_v0 = vpop.f32.mrf.mxu1 }
 0x1c4   : > { %v1355_v9 = vpop.f32.mrf.mxu0  ;;  %4622 = vst [vmem:[#allocation7_spill] sm:$0xff] %v4354_v0 }
 0x1c5   : > { %v2448_v51 = vadd.f32 %v2447_v42, %v2345_v58  ;;  %v2346_v61 = vmul.f32 %v4618_v5, %v1355_v9 }
 0x1c6   : > { %v1359_v10 = vpop.f32.mrf.mxu0 }
 0x1c7   : > { %v2517_v28 = vadd.f32 %v2516_v48, %v2346_v61  ;;  %v2347_v27 = vmul.f32 %v4619_v7, %v1359_v10  ;;  %v4358_v48 = vpop.f32.mrf.mxu1 }
 0x1c8   : > { %v1361_v18 = vpop.f32.mrf.mxu0  ;;  %4624 = vst [vmem:[#allocation8_spill] sm:$0xff] %v4358_v48 }
 0x1c9   : > { %v2449_v12 = vadd.f32 %v2448_v51, %v2347_v27  ;;  %v2348_v25 = vmul.f32 %v4620_v31, %v1361_v18  ;;  %v4362_v10 = vpop.f32.mrf.mxu1 }
 0x1ca   : > { %v1365_v24 = vpop.f32.mrf.mxu0  ;;  %4625 = vst [vmem:[#allocation9_spill] sm:$0xff] %v4362_v10 }
 0x1cb   : > { %v2518_v54 = vadd.f32 %v2517_v28, %v2348_v25  ;;  %v2349_v32 = vmul.f32 %v4621_v30, %v1365_v24  ;;  %v4366_v31 = vpop.f32.mrf.mxu1 }
 0x1cc   : > { %v1367_v43 = vpop.f32.mrf.mxu0  ;;  %4626 = vst [vmem:[#allocation10_spill] sm:$0xff] %v4366_v31 }
 0x1cd   : > { %v2450_v36 = vadd.f32 %v2449_v12, %v2349_v32  ;;  %v2350_v38 = vmul.f32 %v4623_v41, %v1367_v43  ;;  %v4370_v32 = vpop.f32.mrf.mxu1 }
 0x1ce   : > { %v1371_v42 = vpop.f32.mrf.mxu0  ;;  %4627 = vst [vmem:[#allocation11_spill] sm:$0xff] %v4370_v32 }
 0x1cf   : > { %v2519_v60 = vadd.f32 %v2518_v54, %v2350_v38  ;;  %v2351_v50 = vmul.f32 %v4141_v53, %v1371_v42  ;;  %v4374_v42 = vpop.f32.mrf.mxu1 }
 0x1d0   : > { %v1373_v44 = vpop.f32.mrf.mxu0  ;;  %4628 = vst [vmem:[#allocation12_spill] sm:$0xff] %v4374_v42 }
 0x1d1   : > { %v2451_v3 = vadd.f32 %v2450_v36, %v2351_v50  ;;  %v2352_v58 = vmul.f32 %v4145_v4, %v1373_v44 }
 0x1d2   : > { %v1377_v9 = vpop.f32.mrf.mxu0 }
 0x1d3   : > { %v2520_v51 = vadd.f32 %v2519_v60, %v2352_v58  ;;  %v2353_v5 = vmul.f32 %v4155_v29, %v1377_v9  ;;  %v4378_v58 = vpop.f32.mrf.mxu1 }
 0x1d4   : > { %v1379_v61 = vpop.f32.mrf.mxu0  ;;  %4629 = vst [vmem:[#allocation13_spill] sm:$0xff] %v4378_v58 }
 0x1d5   : > { %v2452_v28 = vadd.f32 %v2451_v3, %v2353_v5  ;;  %v2354_v7 = vmul.f32 %v4159_v62, %v1379_v61  ;;  %v4380_v5 = vpop.f32.mrf.mxu1 }
 0x1d6   : > { %v1383_v27 = vpop.f32.mrf.mxu0  ;;  %4630 = vst [vmem:[#allocation14_spill] sm:$0xff] %v4380_v5 }
 0x1d7   : > { %v2521_v18 = vadd.f32 %v2520_v51, %v2354_v7  ;;  %v2355_v53 = vmul.f32 %v4169_v21, %v1383_v27 }
 0x1d8   : > { %v1385_v12 = vpop.f32.mrf.mxu0 }
 0x1d9   : > { %v2453_v25 = vadd.f32 %v2452_v28, %v2355_v53  ;;  %v2356_v4 = vmul.f32 %v4173_v26, %v1385_v12  ;;  %v4382_v28 = vpop.f32.mrf.mxu1 }
 0x1da   : > { %v1389_v24 = vpop.f32.mrf.mxu0  ;;  %4631 = vst [vmem:[#allocation15_spill] sm:$0xff] %v4382_v28 }
 0x1db   : > { %v2522_v54 = vadd.f32 %v2521_v18, %v2356_v4  ;;  %v2357_v29 = vmul.f32 %v4183_v57, %v1389_v24  ;;  %v4384_v18 = vpop.f32.mrf.mxu1 }
 0x1dc   : > { %v1391_v30 = vpop.f32.mrf.mxu0  ;;  %4632 = vst [vmem:[#allocation16_spill] sm:$0xff] %v4384_v18 }
 0x1dd   : > { %v2454_v43 = vadd.f32 %v2453_v25, %v2357_v29  ;;  %v2358_v62 = vmul.f32 %v4187_v52, %v1391_v30  ;;  %v4386_v12 = vpop.f32.mrf.mxu1 }
 0x1de   : > { %v1395_v36 = vpop.f32.mrf.mxu0  ;;  %4633 = vst [vmem:[#allocation17_spill] sm:$0xff] %v4386_v12 }
 0x1df   : > { %v2523_v41 = vadd.f32 %v2522_v54, %v2358_v62  ;;  %v2359_v21 = vmul.f32 %v4197_v37, %v1395_v36  ;;  %v4388_v4 = vpop.f32.mrf.mxu1 }
 0x1e0   : > { %v1397_v38 = vpop.f32.mrf.mxu0  ;;  %4634 = vst [vmem:[#allocation18_spill] sm:$0xff] %v4388_v4 }
 0x1e1   : > { %v2455_v60 = vadd.f32 %v2454_v43, %v2359_v21  ;;  %v2360_v26 = vmul.f32 %v4201_v46, %v1397_v38  ;;  %v4390_v29 = vpop.f32.mrf.mxu1 }
 0x1e2   : > { %v1401_v50 = vpop.f32.mrf.mxu0  ;;  %4635 = vst [vmem:[#allocation19_spill] sm:$0xff] %v4390_v29 }
 0x1e3   : > { %v2524_v44 = vadd.f32 %v2523_v41, %v2360_v26  ;;  %v2361_v57 = vmul.f32 %v4211_v1, %v1401_v50  ;;  %v4392_v62 = vpop.f32.mrf.mxu1 }
 0x1e4   : > { %v1403_v3 = vpop.f32.mrf.mxu0  ;;  %4636 = vst [vmem:[#allocation20_spill] sm:$0xff] %v4392_v62 }
 0x1e5   : > { %v2456_v9 = vadd.f32 %v2455_v60, %v2361_v57  ;;  %v4396_v21 = vpop.f32.mrf.mxu1 }
 0x1e6   : > { %v1407_v51 = vpop.f32.mrf.mxu0  ;;  %4637 = vst [vmem:[#allocation21_spill] sm:$0xff] %v4396_v21 }
 0x1e7   : > { %v4402_v26 = vpop.f32.mrf.mxu1  ;;  %v2363_v48 = vmul.f32 %v4225_v2, %v1407_v51 }
 0x1e8   : > { %v1409_v52 = vpop.f32.mrf.mxu0  ;;  %4638 = vst [vmem:[#allocation22_spill] sm:$0xff] %v4402_v26 }
 0x1e9   : > { %v4408_v29 = vpop.f32.mrf.mxu1 }
 0x1ea   : > { %v1413_v61 = vpop.f32.mrf.mxu0  ;;  %4639 = vst [vmem:[#allocation23_spill] sm:$0xff] %v4408_v29 }
 0x1eb   : > { %v4414_v12 = vpop.f32.mrf.mxu1 }
 0x1ec   : > { %v1415_v37 = vpop.f32.mrf.mxu0  ;;  %4640 = vst [vmem:[#allocation24_spill] sm:$0xff] %v4414_v12 }
 0x1ed   : > { %v4420_v28 = vpop.f32.mrf.mxu1 }
 0x1ee   : > { %v1419_v7 = vpop.f32.mrf.mxu0  ;;  %4641 = vst [vmem:[#allocation25_spill] sm:$0xff] %v4420_v28  ;;  %v2362_v28 = vmul.f32 %v4215_v8, %v1403_v3 }
 0x1ef   : > { %v4426_v58 = vpop.f32.mrf.mxu1 }
 0x1f0   : > { %v1421_v27 = vpop.f32.mrf.mxu0  ;;  %4644 = vst [vmem:[#allocation28_spill] sm:$0xff] %v4426_v58  ;;  %v2364_v58 = vmul.f32 %v4229_v20, %v1409_v52 }
 0x1f1   : > { %v4432_v32 = vpop.f32.mrf.mxu1  ;;  %v2368_v3 = vmul.f32 %v4257_v63, %v1421_v27 }
 0x1f2   : > { %v1425_v46 = vpop.f32.mrf.mxu0  ;;  %4647 = vst [vmem:[#allocation31_spill] sm:$0xff] %v4432_v32  ;;  %v2525_v32 = vadd.f32 %v2524_v44, %v2362_v28 }
 0x1f3   : > { %v4438_v10 = vpop.f32.mrf.mxu1  ;;  %v2369_v20 = vmul.f32 %v4267_v45, %v1425_v46 }
 0x1f4   : > { %v1427_v53 = vpop.f32.mrf.mxu0  ;;  %4650 = vst [vmem:[#allocation34_spill] sm:$0xff] %v4438_v10  ;;  %v2367_v10 = vmul.f32 %v4253_v34, %v1419_v7  ;;  %v2526_v8 = vadd.f32 %v2525_v32, %v2364_v58 }
 0x1f6   : > { %v1431_v1 = vpop.f32.mrf.mxu0 }
 0x1f8   : > { %v1433_v25 = vpop.f32.mrf.mxu0 }
 0x1fa   : > { %v1437_v24 = vpop.f32.mrf.mxu0 }
 0x1fb   : > { %v2373_v63 = vmul.f32 %v4295_v13, %v1437_v24 }
 0x1fc   : > { %v1439_v54 = vpop.f32.mrf.mxu0 }
 0x1fe   : > { %v1443_v30 = vpop.f32.mrf.mxu0 }
 0x200   : > { %v1445_v43 = vpop.f32.mrf.mxu0 }
 0x201   : > { %v2376_v7 = vmul.f32 %v4310_v35, %v1445_v43 }
 0x202   : > { %v1449_v36 = vpop.f32.mrf.mxu0 }
 0x204   : > { %v4394_v41 = vpop.f32.mrf.mxu0 }
 0x206   : > { %v4398_v38 = vpop.f32.mrf.mxu0 }
 0x208   : > { %v4400_v60 = vpop.f32.mrf.mxu0 }
 0x209   : > { %v2380_v35 = vmul.f32 %v4326_v22, %v4400_v60 }
 0x20a   : > { %v4404_v50 = vpop.f32.mrf.mxu0 }
 0x20c   : > { %v4406_v57 = vpop.f32.mrf.mxu0 }
 0x20e   : > { %v4410_v4 = vpop.f32.mrf.mxu0 }
 0x210   : > { %v4412_v62 = vpop.f32.mrf.mxu0 }
 0x211   : > { %v2384_v22 = vmul.f32 %v4342_v19, %v4412_v62 }
 0x212   : > { %v4416_v18 = vpop.f32.mrf.mxu0 }
 0x214   : > { %v4418_v21 = vpop.f32.mrf.mxu0 }
 0x216   : > { %v4422_v5 = vpop.f32.mrf.mxu0 }
 0x217   : > { %4642 = vst [vmem:[#allocation26_spill] sm:$0xff] %v4422_v5 }
 0x218   : > { %v4424_v26 = vpop.f32.mrf.mxu0 }
 0x219   : > { %4643 = vst [vmem:[#allocation27_spill] sm:$0xff] %v4424_v26 }
 0x21a   : > { %v4428_v42 = vpop.f32.mrf.mxu0 }
 0x21b   : > { %4645 = vst [vmem:[#allocation29_spill] sm:$0xff] %v4428_v42  ;;  %v2365_v42 = vmul.f32 %v4239_v6, %v1413_v61 }
 0x21c   : > { %v4430_v29 = vpop.f32.mrf.mxu0 }
 0x21d   : > { %4646 = vst [vmem:[#allocation30_spill] sm:$0xff] %v4430_v29  ;;  %v4448_v29 = vpop.f32.mrf.mxu1 }
 0x21e   : > { %v4434_v31 = vpop.f32.mrf.mxu0 }
 0x21f   : > { %4648 = vst [vmem:[#allocation32_spill] sm:$0xff] %v4434_v31  ;;  %v2457_v31 = vadd.f32 %v2456_v9, %v2363_v48  ;;  %v4458_v6 = vpop.f32.mrf.mxu1  ;;  %v2370_v48 = vmul.f32 %v4271_v39, %v1427_v53  ;;  %v2375_v39 = vmul.f32 %v4305_v17, %v1443_v30 }
 0x220   : > { %v4436_v12 = vpop.f32.mrf.mxu0 }
 0x221   : > { %4649 = vst [vmem:[#allocation33_spill] sm:$0xff] %v4436_v12  ;;  %v2366_v12 = vmul.f32 %v4243_v23, %v1415_v37  ;;  %v2458_v2 = vadd.f32 %v2457_v31, %v2365_v42  ;;  %v2371_v23 = vmul.f32 %v4281_v15, %v1431_v1  ;;  %v2372_v31 = vmul.f32 %v4285_v16, %v1433_v25  ;;  %v4468_v45 = vpop.f32.mrf.mxu1 }
 0x222   : > { %v4442_v0 = vpop.f32.mrf.mxu0  ;;  %v2377_v16 = vmul.f32 %v4314_v11, %v1449_v36  ;;  %v2381_v11 = vmul.f32 %v4330_v40, %v4404_v50  ;;  %v2385_v40 = vmul.f32 %v4346_v56, %v4416_v18  ;;  %v4655_v62 = vld [vmem:[#allocation29_spill] sm:$0xff] }
 0x223   : > { %v2527_v52 = vadd.f32 %v2526_v8, %v2366_v12  ;;  %v2459_v61 = vadd.f32 %v2458_v2, %v2367_v10  ;;  %v2374_v10 = vmul.f32 %v4299_v55, %v1439_v54  ;;  %v4478_v13 = vpop.f32.mrf.mxu1  ;;  %v2378_v12 = vmul.f32 %v4318_v49, %v4394_v41 }
 0x224   : > { %v4446_v26 = vpop.f32.mrf.mxu0  ;;  %v2379_v55 = vmul.f32 %v4322_v47, %v4398_v38  ;;  %v2382_v49 = vmul.f32 %v4334_v33, %v4406_v57  ;;  %v2383_v47 = vmul.f32 %v4338_v59, %v4410_v4  ;;  %v2386_v33 = vmul.f32 %v4350_v14, %v4418_v21  ;;  %v4651_v57 = vld [vmem:[#allocation26_spill] sm:$0xff] }
 0x225   : > { %v2528_v34 = vadd.f32 %v2527_v52, %v2368_v3  ;;  %v2460_v9 = vadd.f32 %v2459_v61, %v2369_v20  ;;  %v4488_v54 = vpop.f32.mrf.mxu1  ;;  %v4652_v3 = vld [vmem:[#allocation7_spill] sm:$0xff] }
 0x226   : > { %v4452_v5 = vpop.f32.mrf.mxu0  ;;  %v2387_v59 = vmul.f32 %v4652_v3, %v4651_v57  ;;  %v4653_v61 = vld [vmem:[#allocation27_spill] sm:$0xff]  ;;  %v4659_v21 = vld [vmem:[#allocation32_spill] sm:$0xff] }
 0x227   : > { %v2529_v42 = vadd.f32 %v2528_v34, %v2370_v48  ;;  %v2461_v58 = vadd.f32 %v2460_v9, %v2371_v23  ;;  %v4498_v50 = vpop.f32.mrf.mxu1  ;;  %v4654_v48 = vld [vmem:[#allocation8_spill] sm:$0xff]  ;;  %v4656_v23 = vld [vmem:[#allocation9_spill] sm:$0xff] }
 0x228   : > { %v4456_v51 = vpop.f32.mrf.mxu0  ;;  %v2388_v19 = vmul.f32 %v4654_v48, %v4653_v61  ;;  %v2389_v56 = vmul.f32 %v4656_v23, %v4655_v62  ;;  %v4671_v62 = vld [vmem:[#allocation21_spill] sm:$0xff] }
 0x229   : > { %v2530_v15 = vadd.f32 %v2529_v42, %v2372_v31  ;;  %v2462_v28 = vadd.f32 %v2461_v58, %v2373_v63  ;;  %v4508_v34 = vpop.f32.mrf.mxu1  ;;  %v4657_v63 = vld [vmem:[#allocation30_spill] sm:$0xff]  ;;  %v4660_v58 = vld [vmem:[#allocation11_spill] sm:$0xff] }
 0x22a   : > { %v4462_v44 = vpop.f32.mrf.mxu0  ;;  %v4658_v42 = vld [vmem:[#allocation10_spill] sm:$0xff] }
 0x22b   : > { %v2531_v46 = vadd.f32 %v2530_v15, %v2374_v10  ;;  %v2463_v53 = vadd.f32 %v2462_v28, %v2375_v39  ;;  %v2390_v14 = vmul.f32 %v4658_v42, %v4657_v63  ;;  %v2391_v10 = vmul.f32 %v4660_v58, %v4659_v21  ;;  %v4672_v63 = vld [vmem:[#allocation22_spill] sm:$0xff] }
 0x22c   : > { %v4466_v32 = vpop.f32.mrf.mxu0 }
 0x22d   : > { %v2532_v1 = vadd.f32 %v2531_v46, %v2376_v7  ;;  %v2464_v25 = vadd.f32 %v2463_v53, %v2377_v16  ;;  %v4661_v7 = vld [vmem:[#allocation33_spill] sm:$0xff]  ;;  %v4662_v16 = vld [vmem:[#allocation12_spill] sm:$0xff] }
 0x22e   : > { %v4472_v37 = vpop.f32.mrf.mxu0  ;;  %v2392_v46 = vmul.f32 %v4662_v16, %v4661_v7  ;;  %v4663_v53 = vld [vmem:[#allocation13_spill] sm:$0xff] }
 0x22f   : > { %v2533_v30 = vadd.f32 %v2532_v1, %v2378_v12  ;;  %v2465_v43 = vadd.f32 %v2464_v25, %v2379_v55  ;;  %v2393_v12 = vmul.f32 %v4663_v53, %v4442_v0  ;;  %v4518_v1 = vpop.f32.mrf.mxu1 }
 0x230   : > { %v4476_v27 = vpop.f32.mrf.mxu0 }
 0x231   : > { %v2534_v41 = vadd.f32 %v2533_v30, %v2380_v35  ;;  %v2466_v38 = vadd.f32 %v2465_v43, %v2381_v11  ;;  %v4664_v11 = vld [vmem:[#allocation14_spill] sm:$0xff]  ;;  %v4665_v43 = vld [vmem:[#allocation15_spill] sm:$0xff] }
 0x232   : > { %v1521_v17 = vpop.f32.mrf.mxu0  ;;  %v2394_v30 = vmul.f32 %v4664_v11, %v4446_v26 }
 0x233   : > { %v2535_v8 = vadd.f32 %v2534_v41, %v2382_v49  ;;  %v2467_v2 = vadd.f32 %v2466_v38, %v2383_v47  ;;  %v2395_v49 = vmul.f32 %v4665_v43, %v4452_v5  ;;  %v2401_v23 = vmul.f32 %v4671_v62, %v1521_v17  ;;  %v2573_v17 = vpop.permute.xlu1 %2572 }
 0x234   : > { %v1523_v24 = vpop.f32.mrf.mxu0 }
 0x235   : > { %v2536_v20 = vadd.f32 %v2535_v8, %v2384_v22  ;;  %v2468_v52 = vadd.f32 %v2467_v2, %v2385_v40  ;;  %v4666_v22 = vld [vmem:[#allocation16_spill] sm:$0xff]  ;;  %v4667_v8 = vld [vmem:[#allocation17_spill] sm:$0xff]  ;;  %v2402_v42 = vmul.f32 %v4672_v63, %v1523_v24  ;;  %v4677_v24 = vld [vmem:[#allocation31_spill] sm:$0xff] }
 0x236   : > { %v1527_v36 = vpop.f32.mrf.mxu0  ;;  %v2396_v40 = vmul.f32 %v4666_v22, %v4456_v51  ;;  %v2397_v0 = vmul.f32 %v4667_v8, %v4462_v44  ;;  %v2913_v22 = vld [vmem:[%s3123_s17] sm:$0xff] }
 0x237   : > { %v2537_v9 = vadd.f32 %v2536_v20, %v2386_v33  ;;  %v2469_v31 = vadd.f32 %v2468_v52, %v2387_v59  ;;  %v4528_v33 = vpop.f32.mrf.mxu1  ;;  %v4668_v59 = vld [vmem:[#allocation18_spill] sm:$0xff]  ;;  %v4669_v20 = vld [vmem:[#allocation19_spill] sm:$0xff] }
 0x238   : > { %v1529_v60 = vpop.f32.mrf.mxu0  ;;  %v2398_v26 = vmul.f32 %v4668_v59, %v4466_v32  ;;  %v2399_v5 = vmul.f32 %v4669_v20, %v4472_v37  ;;  %v4674_v37 = vld [vmem:[#allocation24_spill] sm:$0xff]  ;;  %v2914_v59 = vld [vmem:[%s3123_s17 + $0x18] sm:$0xff] }
 0x239   : > { %v2538_v15 = vadd.f32 %v2537_v9, %v2388_v19  ;;  %v2470_v28 = vadd.f32 %v2469_v31, %v2389_v56  ;;  %v4670_v19 = vld [vmem:[#allocation20_spill] sm:$0xff]  ;;  %v2276_v56 = vpop.f32.mrf.mxu1 }
 0x23a   : > { %v1533_v4 = vpop.f32.mrf.mxu0  ;;  %v2400_v51 = vmul.f32 %v4670_v19, %v4476_v27  ;;  %v2915_v20 = vld [vmem:[%s3123_s17 + $0x8] sm:$0xff] }
 0x23b   : > { %v2539_v25 = vadd.f32 %v2538_v15, %v2390_v14  ;;  %v2471_v35 = vadd.f32 %v2470_v28, %v2391_v10  ;;  %v4673_v14 = vld [vmem:[#allocation23_spill] sm:$0xff]  ;;  %v2404_v15 = vmul.f32 %v4674_v37, %v1529_v60  ;;  %v4675_v28 = vld [vmem:[#allocation25_spill] sm:$0xff]  ;;  %v2280_v16 = vpop.f32.mrf.mxu1 }
 0x23c   : > { %v1535_v18 = vpop.f32.mrf.mxu0  ;;  %v2403_v21 = vmul.f32 %v4673_v14, %v1527_v36  ;;  %v2405_v7 = vmul.f32 %v4675_v28, %v1533_v4 }
 0x23d   : > { %v2540_v41 = vadd.f32 %v2539_v25, %v2392_v46  ;;  %v2472_v38 = vadd.f32 %v2471_v35, %v2393_v12  ;;  %v2568_v46 = vpop.permute.xlu0 %2567  ;;  %v4676_v25 = vld [vmem:[#allocation28_spill] sm:$0xff] }
 0x23e   : > { %v1539_v39 = vpop.f32.mrf.mxu0  ;;  %v2406_v35 = vmul.f32 %v4676_v25, %v1535_v18 }
 0x23f   : > { %v2541_v57 = vadd.f32 %v2540_v41, %v2394_v30  ;;  %v2473_v3 = vadd.f32 %v2472_v38, %v2395_v49  ;;  %v2407_v11 = vmul.f32 %v4677_v24, %v1539_v39  ;;  %v4678_v49 = vld [vmem:[#allocation34_spill] sm:$0xff]  ;;  %v2912_v41 = vld [vmem:[%s3123_s17 + $0x10] sm:$0xff]  ;;  %s2595_s17 = sld [smem:[#allocation2]] }
 0x240   : > { %v1541_v55 = vpop.f32.mrf.mxu0  ;;  %v2577_v38 = vmul.f32 %v2912_v41, %v2573_v17 }
 0x241   : > { %v2542_v61 = vadd.f32 %v2541_v57, %v2396_v40  ;;  %v2474_v48 = vadd.f32 %v2473_v3, %v2397_v0  ;;  %v2408_v60 = vmul.f32 %v4678_v49, %v1541_v55  ;;  %v2575_v40 = vmul.f32 %v2913_v22, %v2568_v46  ;;  %v2282_v0 = vpop.f32.mrf.mxu1 }
 0x242   : > { %v1545_v47 = vpop.f32.mrf.mxu0 }
 0x243   : > { %v2543_v9 = vadd.f32 %v2542_v61, %v2398_v26  ;;  %v2475_v31 = vadd.f32 %v2474_v48, %v2399_v5  ;;  %v2409_v4 = vmul.f32 %v4448_v29, %v1545_v47  ;;  %v2578_v26 = vmul.f32 %v2914_v59, %v2573_v17  ;;  %v2286_v62 = vpop.f32.mrf.mxu1 }
 0x244   : > { %v1547_v2 = vpop.f32.mrf.mxu0  ;;  %v2576_v5 = vmul.f32 %v2915_v20, %v2568_v46  ;;  %v2579_v19 = vadd.f32 %v2577_v38, %v2575_v40 }
 0x245   : > { %v2544_v58 = vadd.f32 %v2543_v9, %v2400_v51  ;;  %v2476_v10 = vadd.f32 %v2475_v31, %v2401_v23  ;;  %v2410_v18 = vmul.f32 %v4458_v6, %v1547_v2 }
 0x246   : > { %v1551_v52 = vpop.f32.mrf.mxu0  ;;  %v2586_v2 = vadd.f32 %v2578_v26, %v2576_v5 }
 0x247   : > { %v2545_v53 = vadd.f32 %v2544_v58, %v2402_v42  ;;  %v2477_v12 = vadd.f32 %v2476_v10, %v2403_v21  ;;  %v2411_v39 = vmul.f32 %v4468_v45, %v1551_v52 }
 0x248   : > { %v1553_v44 = vpop.f32.mrf.mxu0  ;;  %v2587_v37 = vrot.slane %v2586_v2, 4 }
 0x249   : > { %v2546_v30 = vadd.f32 %v2545_v53, %v2404_v15  ;;  %v2478_v43 = vadd.f32 %v2477_v12, %v2405_v7  ;;  %v2412_v29 = vmul.f32 %v4478_v13, %v1553_v44  ;;  %v2580_v13 = vrot.slane %v2579_v19, 4 }
 0x24a   : > { %v1557_v32 = vpop.f32.mrf.mxu0  ;;  %v2588_v25 = vadd.f32 %v2587_v37, %v2586_v2 }
 0x24b   : > { %v2547_v57 = vadd.f32 %v2546_v30, %v2406_v35  ;;  %v2479_v3 = vadd.f32 %v2478_v43, %v2407_v11  ;;  %v2413_v47 = vmul.f32 %v4488_v54, %v1557_v32  ;;  %v2288_v54 = vpop.f32.mrf.mxu1  ;;  %v2581_v46 = vadd.f32 %v2580_v13, %v2579_v19 }
 0x24c   : > { %v1559_v27 = vpop.f32.mrf.mxu0 }
 0x24d   : > { %v2548_v55 = vadd.f32 %v2547_v57, %v2408_v60  ;;  %v2480_v48 = vadd.f32 %v2479_v3, %v2409_v4  ;;  %v2414_v6 = vmul.f32 %v4498_v50, %v1559_v27  ;;  %v2292_v17 = vpop.f32.mrf.mxu1  ;;  %v2589_v60 = vrot.slane %v2588_v25, 2 }
 0x24e   : > { %v1563_v36 = vpop.f32.mrf.mxu0 }
 0x24f   : > { %v2549_v23 = vadd.f32 %v2548_v55, %v2410_v18  ;;  %v2481_v9 = vadd.f32 %v2480_v48, %v2411_v39  ;;  %v2415_v45 = vmul.f32 %v4508_v34, %v1563_v36  ;;  %v2294_v36 = vpop.f32.mrf.mxu1  ;;  %v2596_v48 = vstv %s2595_s17 }
 0x250   : > { %v1565_v8 = vpop.f32.mrf.mxu0 }
 0x251   : > { %v2550_v31 = vadd.f32 %v2549_v23, %v2412_v29  ;;  %v2482_v63 = vadd.f32 %v2481_v9, %v2413_v47  ;;  %v2416_v42 = vmul.f32 %v4518_v1, %v1565_v8  ;;  %v2590_v8 = vadd.f32 %v2589_v60, %v2588_v25 }
 0x252   : > { %v1569_v61 = vpop.f32.mrf.mxu0 }
 0x253   : > { %v2417_v14 = vmul.f32 %v4528_v33, %v1569_v61  ;;  %v2551_v21 = vadd.f32 %v2550_v31, %v2414_v6  ;;  %v2483_v32 = vadd.f32 %v2482_v63, %v2415_v45  ;;  %v2591_v59 = vrot.slane %v2590_v8, 1 }
 0x254   : > { %v1571_v51 = vpop.f32.mrf.mxu0  ;;  %v2980_v63 = vmov 1966171168  }
 0x255   : > { %v2418_v58 = vmul.f32 %v2276_v56, %v1571_v51  ;;  %v2552_v50 = vadd.f32 %v2551_v21, %v2416_v42  ;;  %v2484_v28 = vadd.f32 %v2483_v32, %v2417_v14  ;;  %v2592_v29 = vadd.f32 %v2591_v59, %v2590_v8 }
 0x256   : > { %v1575_v52 = vpop.f32.mrf.mxu0  ;;  %v2615_v42 = vunpack.c.l.s4 %v2980_v63  ;;  %v2617_v14 = vlaneseq }
 0x257   : > { %v2419_v10 = vmul.f32 %v2280_v16, %v1575_v52  ;;  %v2553_v53 = vadd.f32 %v2552_v50, %v2418_v58  ;;  %v2582_v16 = vrot.slane %v2581_v46, 2 }
 0x258   : > { %v1577_v44 = vpop.f32.mrf.mxu0  ;;  %v2616_v13 = vunpack.c.0.s8 %v2615_v42  ;;  %vm2631_vm1 = vcmp.lt.s32.totalorder %v2617_v14, 256 }
 0x259   : > { %v2420_v34 = vmul.f32 %v2282_v0, %v1577_v44  ;;  %v2485_v1 = vadd.f32 %v2484_v28, %v2419_v10  ;;  %v2583_v38 = vadd.f32 %v2582_v16, %v2581_v46  ;;  %v2618_v44 = vshrl.u32 %v2617_v14, 7 }
 0x25a   : > { %v1581_v15 = vpop.f32.mrf.mxu0 }
 0x25b   : > { %v2421_v7 = vmul.f32 %v2286_v62, %v1581_v15  ;;  %v2554_v35 = vadd.f32 %v2553_v53, %v2420_v34  ;;  %v2584_v3 = vrot.slane %v2583_v38, 1  ;;  %v2619_v21 = vsub.s32 %v2616_v13, %v2618_v44 }
 0x25c   : > { %v1583_v27 = vpop.f32.mrf.mxu0 }
 0x25d   : > { %v2422_v12 = vmul.f32 %v2288_v54, %v1583_v27  ;;  %v2486_v24 = vadd.f32 %v2485_v1, %v2421_v7  ;;  %v2585_v5 = vadd.f32 %v2584_v3, %v2583_v38 }
 0x25e   : > { %v1587_v33 = vpop.f32.mrf.mxu0 }
 0x25f   : > { %v2423_v11 = vmul.f32 %v2292_v17, %v1587_v33  ;;  %v2555_v30 = vadd.f32 %v2554_v35, %v2422_v12 }
 0x260   : > { %v1589_v56 = vpop.f32.mrf.mxu0 }
 0x261   : > { %v2487_v43 = vadd.f32 %v2486_v24, %v2423_v11  ;;  %v2424_v49 = vmul.f32 %v2294_v36, %v1589_v56 }
 0x263   : > { %v2488_v4 = vrot.slane %v2487_v43, 4  ;;  %v2556_v41 = vadd.f32 %v2555_v30, %v2424_v49 }
 0x265   : > { %v2489_v22 = vadd.f32 %v2488_v4, %v2487_v43  ;;  %v2557_v40 = vrot.slane %v2556_v41, 4 }
 0x267   : > { %v2490_v0 = vrot.slane %v2489_v22, 2  ;;  %v2558_v57 = vadd.f32 %v2557_v40, %v2556_v41 }
 0x269   : > { %v2491_v18 = vadd.f32 %v2490_v0, %v2489_v22  ;;  %v2559_v39 = vrot.slane %v2558_v57, 2 }
 0x26b   : > { %v2492_v26 = vrot.slane %v2491_v18, 1  ;;  %v2560_v20 = vadd.f32 %v2559_v39, %v2558_v57 }
 0x26d   : > { %v2493_v61 = vadd.f32 %v2492_v26, %v2491_v18  ;;  %v2561_v55 = vrot.slane %v2560_v20, 1 }
 0x26f   : > { %v2593_v47 = vadd.f32 %v2585_v5, %v2493_v61  ;;  %v2562_v19 = vadd.f32 %v2561_v55, %v2560_v20 }
 0x271   : > { %v2597_v51 = vadd.f32 %v2596_v48, %v2593_v47  ;;  %v2594_v62 = vadd.f32 %v2592_v29, %v2562_v19 }
 0x273   : > { %v2851_v23 = vmul.f32 -1.442695, %v2597_v51  ;;  %v2598_v9 = vadd.f32 %v2596_v48, %v2594_v62 }
 0x275   : > { %2904 = vpow2.f32 %v2851_v23  ;;  %v2852_v6 = vmul.f32 -1.442695, %v2598_v9 }
 0x277   : > { %2906 = vpow2.f32 %v2852_v6 }
 0x282   : > { %v2905_v45 = vpop.eup %2904 }
 0x283   : > { %v2605_v2 = vadd.f32 1.0, %v2905_v45 }
 0x284   : > { %v2907_v52 = vpop.eup %2906 }
 0x285   : > { %v2606_v31 = vadd.f32 1.0, %v2907_v52  ;;  %2908 = vrcp.f32 %v2605_v2 }
 0x287   : > { %2910 = vrcp.f32 %v2606_v31 }
 0x292   : > { %v2909_v54 = vpop.eup %2908 }
 0x294   : > { %v2911_v32 = vpop.eup %2910 }
 0x295   : > { %v2613_v58 = vcombine.low %v2909_v54, %v2911_v32 }
 0x297   : > { %v2620_v10 = vrot.slane %v2613_v58, %v2619_v21 }
 0x299   : > { %v2627_v37 = vrot.slane %v2620_v10, %v2619_v21 }
 0x29b   : > { %2633 = vst.msk [vmem:[%s303_s18] sm:$0x3] %vm2631_vm1, %v2627_v37 }
 0x29c   : > { %2929 = shalt.err (!%p2926_p5)
}
 0x29d   : > { %s2930_s10 = scalar_lea.hbm %s2647_s23, 32  ;;  %s2934_s17 = scalar_lea.hbm %s4601_s7, 64 }
 0x29e   : > { %p2931_p7 = scmp.ne.s32.totalorder %s2647_s23, %s2930_s10  ;;  %p2935_p12 = scmp.lt.s32.totalorder %s2647_s23, %s4601_s7 }
 0x29f   : > { %p2936_p13 = scmp.lt.s32.totalorder %s2934_s17, %s2930_s10 }
 0x2a0   : > { %p2932_p10 = pnand %p2931_p7, %p3063_p6 }
 0x2a1   : > { %p2937_p0 = por %p2936_p13, %p2935_p12 }
 0x2a2   : > { %p2933_p11 = pneg %p2932_p10 }
 0x2a4   : > { %p2938_p9 = pnand %p2937_p0, %p2933_p11 }
 0x2a6   : > { %2941 = shalt.err (!%p2938_p9)
}
 0x2a7   : > { %2860 = dma.vmem_to_hbm [thread:$0]  (%p3063_p6), %s2650_s19, 32, %s2647_s23, %s2635_s24  }
 0x2a8 PF: > { %s2661_s18 = sand.u32 1, %s2964_s26   ;;  %p4679_p1 = scmp.ge.s32.totalorder %s2976_s29, 2 }
 0x2a9   : > { %s2662_s20 = scalar_lea.sflag [#allocation5], %s2661_s18 }
 0x2aa   : > { %p2863_p2 = pnand %p4679_p1, %p3067_p8 }
 0x2ac   : > { %p2864_p3 = pneg %p2863_p2 }
 0x2ae   : > { %2959 = dma.done.wait (%p2864_p3), %s2662_s20, 32  }
 0x2af   : > { %2961 = vsyncadd (%p2864_p3), %s2662_s20, 4294967264  ;;  %p18_p9 = scmp.ge.s32.totalorder %s3048_s8, 4   ;;  %s4680_s26 = smov %s2968_s27 }
 0x2b0   : > { %s4681_s27 = smov %s2972_s28  ;;  %s4682_s28 = smov %s3061_s11 }
 0x2b1   : > { %s4683_s29 = smov %s3048_s8  ;;  %20 = sbr.rel (!%p18_p9) target bundleno = 5 (0x5), region = 111 }
 0x2b6   :  { %2667 = vsyncpa [#allocation5], 1 }
 0x2b7   :  { %2669 = vsyncpa [#allocation5 + $0x1], 1 }

</bundles_post_ra>
